<compile_context>
chip_gen: v7x
topology: tpu7x:2x2x1
jax: 0.10.0
libtpu: 0.0.40
codegen_flags: <defaults>
</compile_context>

<pallas_src>
import functools

import jax
import jax.numpy as jnp
from jax.experimental import pallas as pl
from jax.experimental.pallas import tpu as pltpu

# ----------------------------- config (small) -----------------------------
IMG_C, IMG_H, IMG_W = 3, 16, 16
PATCH = 8
NUM_PATCHES = (IMG_H // PATCH) * (IMG_W // PATCH)        # 4 image tokens
V_HID, V_HEADS, V_LAYERS, V_MLP = 32, 4, 2, 64           # CLIP-ViT-like tower
V_HEAD_DIM = V_HID // V_HEADS
T_HID, T_HEADS, T_LAYERS, T_MLP = 64, 4, 2, 128          # LLaMA-like decoder
T_HEAD_DIM = T_HID // T_HEADS
VOCAB = 128
MAX_NEW_TOKENS = 4       # TODO(synk): original uses max_new_tokens=200
MAX_PROMPT_LEN = 32
TXT_LEN = MAX_PROMPT_LEN + MAX_NEW_TOKENS                # static text length
SEQ_TOTAL = NUM_PATCHES + TXT_LEN                        # 40 (multiple of 8)
LN_EPS = 1e-5
RMS_EPS = 1e-6
ROPE_THETA = 10000.0

# LLaVA uses vision_feature_layer = -2 (hidden state after the penultimate
# vision layer); deeper vision layers never influence the output, so only the
# first V_LAYERS-1 layers are executed.
V_USED_LAYERS = V_LAYERS - 1


# ----------------------------- in-kernel helpers -----------------------------
def _ln(x, w, b):
    mu = jnp.mean(x, axis=-1, keepdims=True)
    var = jnp.mean(jnp.square(x - mu), axis=-1, keepdims=True)
    return (x - mu) * jax.lax.rsqrt(var + LN_EPS) * w + b


def _rms(x, w):
    var = jnp.mean(jnp.square(x), axis=-1, keepdims=True)
    return x * jax.lax.rsqrt(var + RMS_EPS) * w


def _softmax_rows(s):
    s = s - jnp.max(s, axis=-1, keepdims=True)
    p = jnp.exp(s)
    return p * pl.reciprocal(jnp.sum(p, axis=-1, keepdims=True), approx=True)


# ----------------------------- fused vision kernel -----------------------------
def _vision_tower_kernel(
    patches_ref, pe_w_ref, cls_ref, vpos_ref, pre_w_ref, pre_b_ref,
    ln1_w_ref, ln1_b_ref, ln2_w_ref, ln2_b_ref,
    wqkv_ref, bqkv_ref, wo_ref, ob_ref,
    fc1_w_ref, fc1_b_ref, fc2_w_ref, fc2_b_ref,
    sel_ref, p1_w_ref, p1_b_ref, p2_w_ref, p2_b_ref,
    out_ref, h_scr):
    l = pl.program_id(0)
    nl = pl.num_programs(0)
    bf = jnp.bfloat16

    # layer 0: patch-embed + CLS + positional embedding + pre-LayerNorm
    @pl.when(l == 0)
    def _():
        emb = jnp.dot(patches_ref[...].astype(bf), pe_w_ref[...],
                      preferred_element_type=jnp.float32)       # (1+P, V_HID)
        h0 = emb + cls_ref[...] + vpos_ref[...]
        h_scr[...] = _ln(h0, pre_w_ref[...], pre_b_ref[...])

    h = h_scr[...]

    # --- self-attention (pre-LN); attention scale folded into q weights/bias ---
    hn = _ln(h, ln1_w_ref[...], ln1_b_ref[...])
    hn_b = hn.astype(bf)
    acc = h
    for hd in range(V_HEADS):
        q = jnp.dot(hn_b, wqkv_ref[hd],
                    preferred_element_type=jnp.float32) + bqkv_ref[hd]
        k = jnp.dot(hn_b, wqkv_ref[V_HEADS + hd],
                    preferred_element_type=jnp.float32) + bqkv_ref[V_HEADS + hd]
        v = jnp.dot(hn_b, wqkv_ref[2 * V_HEADS + hd],
                    preferred_element_type=jnp.float32) + bqkv_ref[2 * V_HEADS + hd]
        s = jax.lax.dot_general(q.astype(bf), k.astype(bf),
                                (((1,), (1,)), ((), ())),
                                preferred_element_type=jnp.float32)
        p = _softmax_rows(s)
        o = jnp.dot(p.astype(bf), v.astype(bf),
                    preferred_element_type=jnp.float32)
        acc = acc + jnp.dot(o.astype(bf), wo_ref[hd],
                            preferred_element_type=jnp.float32)
    h = acc + ob_ref[...]

    # --- MLP (pre-LN, quick-gelu) ---
    hn = _ln(h, ln2_w_ref[...], ln2_b_ref[...])
    t = jnp.dot(hn.astype(bf), fc1_w_ref[...],
                preferred_element_type=jnp.float32) + fc1_b_ref[...]
    t = t * jax.nn.sigmoid(1.702 * t)
    h = h + jnp.dot(t.astype(bf), fc2_w_ref[...],
                    preferred_element_type=jnp.float32) + fc2_b_ref[...]
    h_scr[...] = h

    # last used layer: drop CLS (one-hot row selector) + mm projector
    @pl.when(l == nl - 1)
    def _():
        feats = jnp.dot(sel_ref[...], h, preferred_element_type=jnp.float32)
        t = jnp.dot(feats.astype(bf), p1_w_ref[...],
                    preferred_element_type=jnp.float32) + p1_b_ref[...]
        t = jax.nn.gelu(t)
        out_ref[...] = jnp.dot(t.astype(bf), p2_w_ref[...],
                               preferred_element_type=jnp.float32) + p2_b_ref[...]


def encode_image(pk, image):
    """Vision tower (penultimate hidden state, CLS dropped) + mm projector,
    fused into a single pallas_call; layer loop = grid axis, residual stream
    carried in VMEM scratch."""
    x = image[0]
    patches = x.reshape(IMG_C, IMG_H // PATCH, PATCH, IMG_W // PATCH, PATCH)
    patches = patches.transpose(1, 3, 0, 2, 4).reshape(
        NUM_PATCHES, IMG_C * PATCH * PATCH)
    # row 0 is a zero row standing in for the CLS slot (its embedding comes
    # from pk["v_cls"]), so [CLS; patch tokens] is built with a single matmul.
    patches = jnp.concatenate(
        [jnp.zeros((1, patches.shape[1]), jnp.float32), patches], axis=0)

    S = 1 + NUM_PATCHES
    P2 = IMG_C * PATCH * PATCH

    def rep2(shape):
        return pl.BlockSpec(shape, lambda l: (0, 0))

    def lyr(shape):
        n = len(shape)

        def idx(l):
            return (l,) + (0,) * n

        return pl.BlockSpec((None,) + shape, idx)

    return pl.pallas_call(
        _vision_tower_kernel,
        out_shape=jax.ShapeDtypeStruct((NUM_PATCHES, T_HID), jnp.float32),
        grid=(V_USED_LAYERS,),
        in_specs=[
            rep2((S, P2)), rep2((P2, V_HID)), rep2((S, V_HID)), rep2((S, V_HID)),
            rep2((1, V_HID)), rep2((1, V_HID)),
            lyr((1, V_HID)), lyr((1, V_HID)), lyr((1, V_HID)), lyr((1, V_HID)),
            lyr((3 * V_HEADS, V_HID, V_HEAD_DIM)),
            lyr((3 * V_HEADS, 1, V_HEAD_DIM)),
            lyr((V_HEADS, V_HEAD_DIM, V_HID)),
            lyr((1, V_HID)),
            lyr((V_HID, V_MLP)), lyr((1, V_MLP)),
            lyr((V_MLP, V_HID)), lyr((1, V_HID)),
            rep2((NUM_PATCHES, S)),
            rep2((V_HID, T_HID)), rep2((1, T_HID)),
            rep2((T_HID, T_HID)), rep2((1, T_HID)),
        ],
        out_specs=pl.BlockSpec((NUM_PATCHES, T_HID), lambda l: (0, 0)),
        scratch_shapes=[pltpu.VMEM((S, V_HID), jnp.float32)],
        compiler_params=pltpu.CompilerParams(
            dimension_semantics=("arbitrary",)),
    )(patches, pk["v_pe_w"], pk["v_cls"], pk["v_pos"],
      pk["v_pre_w"], pk["v_pre_b"],
      pk["v_ln1_w"], pk["v_ln1_b"], pk["v_ln2_w"], pk["v_ln2_b"],
      pk["v_wqkv"], pk["v_bqkv"], pk["v_wo"], pk["v_ob"],
      pk["v_fc1_w"], pk["v_fc1_b"], pk["v_fc2_w"], pk["v_fc2_b"],
      pk["v_sel"], pk["v_p1_w"], pk["v_p1_b"], pk["v_p2_w"], pk["v_p2_b"])


# ----------------------------- fused decoder kernel -----------------------------
def _decoder_kernel(
    h0_ref, onehot_ref, cos_ref, sin_ref, rot_ref, mask_ref,
    in_norm_ref, wqkv_ref, wo_ref, post_norm_ref, w_gu_ref, w_down_ref,
    final_norm_ref, lm_head_ref,
    logits_ref, h_scr):
    l = pl.program_id(0)
    nl = pl.num_programs(0)
    bf = jnp.bfloat16

    @pl.when(l == 0)
    def _():
        h_scr[...] = h0_ref[...]

    h = h_scr[...]
    cos = cos_ref[...]
    sin = sin_ref[...]
    rot = rot_ref[...]
    mask = mask_ref[...]

    # --- attention block (scale folded into q weights) ---
    hn = _rms(h, in_norm_ref[...])
    hn_b = hn.astype(bf)
    acc = h
    for hd in range(T_HEADS):
        q = jnp.dot(hn_b, wqkv_ref[hd], preferred_element_type=jnp.float32)
        k = jnp.dot(hn_b, wqkv_ref[T_HEADS + hd],
                    preferred_element_type=jnp.float32)
        v = jnp.dot(hn_b, wqkv_ref[2 * T_HEADS + hd],
                    preferred_element_type=jnp.float32)
        # RoPE: x*cos + rotate_half(x)*sin, rotate_half as an exact +/-1
        # permutation-matrix matmul (no sub-lane slicing / rolls).
        q = q * cos + jnp.dot(q, rot, preferred_element_type=jnp.float32) * sin
        k = k * cos + jnp.dot(k, rot, preferred_element_type=jnp.float32) * sin
        s = jax.lax.dot_general(q.astype(bf), k.astype(bf),
                                (((1,), (1,)), ((), ())),
                                preferred_element_type=jnp.float32)
        s = s + mask                      # scores / softmax stay f32
        p = _softmax_rows(s)
        o = jnp.dot(p.astype(bf), v.astype(bf),
                    preferred_element_type=jnp.float32)
        acc = acc + jnp.dot(o.astype(bf), wo_ref[hd],
                            preferred_element_type=jnp.float32)
    h = acc

    # --- SwiGLU MLP block (fused gate|up matmul, lane-aligned split) ---
    hn = _rms(h, post_norm_ref[...])
    gu = jnp.dot(hn.astype(bf), w_gu_ref[...],
                 preferred_element_type=jnp.float32)            # (S, 2*T_MLP)
    g = gu[:, :T_MLP]
    u = gu[:, T_MLP:]
    act = g * jax.nn.sigmoid(g) * u
    h = h + jnp.dot(act.astype(bf), w_down_ref[...],
                    preferred_element_type=jnp.float32)
    h_scr[...] = h

    # last layer: final RMSNorm + lm_head on the current last position only
    @pl.when(l == nl - 1)
    def _():
        hf = _rms(h, final_norm_ref[...])
        row = jnp.dot(onehot_ref[...], hf,
                      preferred_element_type=jnp.float32)       # (1, T_HID)
        logits_ref[...] = jnp.dot(row.astype(bf), lm_head_ref[...],
                                  preferred_element_type=jnp.float32)


def _decoder_call(pk, h0, onehot):
    S = h0.shape[0]

    def rep2(shape):
        return pl.BlockSpec(shape, lambda l: (0, 0))

    def lyr(shape):
        n = len(shape)

        def idx(l):
            return (l,) + (0,) * n

        return pl.BlockSpec((None,) + shape, idx)

    return pl.pallas_call(
        _decoder_kernel,
        out_shape=jax.ShapeDtypeStruct((1, VOCAB), jnp.float32),
        grid=(T_LAYERS,),
        in_specs=[
            rep2((S, T_HID)),                 # embeddings
            rep2((1, S)),                     # last-position one-hot selector
            rep2((S, T_HEAD_DIM)),            # cos
            rep2((S, T_HEAD_DIM)),            # sin
            rep2((T_HEAD_DIM, T_HEAD_DIM)),   # rotate-half matrix
            rep2((S, S)),                     # causal mask
            lyr((1, T_HID)),                  # input rmsnorm
            lyr((3 * T_HEADS, T_HID, T_HEAD_DIM)),   # fused per-head qkv
            lyr((T_HEADS, T_HEAD_DIM, T_HID)),       # per-head o-proj
            lyr((1, T_HID)),                  # post-attn rmsnorm
            lyr((T_HID, 2 * T_MLP)),          # [gate | up]
            lyr((T_MLP, T_HID)),              # down
            rep2((1, T_HID)),                 # final rmsnorm
            rep2((T_HID, VOCAB)),             # lm head
        ],
        out_specs=pl.BlockSpec((1, VOCAB), lambda l: (0, 0)),
        scratch_shapes=[pltpu.VMEM((S, T_HID), jnp.float32)],
        compiler_params=pltpu.CompilerParams(
            dimension_semantics=("arbitrary",)),
    )(h0, onehot, pk["t_cos"], pk["t_sin"], pk["t_rot"], pk["t_mask"],
      pk["t_in_norm"], pk["t_wqkv"], pk["t_wo"], pk["t_post_norm"],
      pk["t_w_gate_up"], pk["t_w_down"], pk["t_final_norm"], pk["t_lm_head"])


# ----------------------------- parameters -----------------------------
def init_params(key):
    keys = iter(jax.random.split(key, 256))

    def nrm(shape, scale=0.02):
        return (scale * jax.random.normal(next(keys), shape)).astype(jnp.float32)

    def ones(d):
        return jnp.ones((1, d), jnp.float32)

    def zeros(d):
        return jnp.zeros((1, d), jnp.float32)

    p = {
        "patch_embed_w": nrm((IMG_C * PATCH * PATCH, V_HID)),
        "cls": nrm((1, V_HID)),
        "vpos": nrm((NUM_PATCHES + 1, V_HID)),
        "pre_ln_w": ones(V_HID), "pre_ln_b": zeros(V_HID),
        "proj1_w": nrm((V_HID, T_HID)), "proj1_b": zeros(T_HID),
        "proj2_w": nrm((T_HID, T_HID)), "proj2_b": zeros(T_HID),
        "embed": nrm((VOCAB, T_HID)),
        "final_norm_w": ones(T_HID),
        "lm_head_w": nrm((T_HID, VOCAB)),
    }
    p["vlayers"] = [dict(
        ln1_w=ones(V_HID), ln1_b=zeros(V_HID),
        ln2_w=ones(V_HID), ln2_b=zeros(V_HID),
        q_w=nrm((V_HID, V_HID)), q_b=zeros(V_HID),
        k_w=nrm((V_HID, V_HID)), k_b=zeros(V_HID),
        v_w=nrm((V_HID, V_HID)), v_b=zeros(V_HID),
        o_w=nrm((V_HID, V_HID)), o_b=zeros(V_HID),
        fc1_w=nrm((V_HID, V_MLP)), fc1_b=zeros(V_MLP),
        fc2_w=nrm((V_MLP, V_HID)), fc2_b=zeros(V_HID),
    ) for _ in range(V_LAYERS)]
    p["tlayers"] = [dict(
        in_norm_w=ones(T_HID), post_norm_w=ones(T_HID),
        q_w=nrm((T_HID, T_HID)), k_w=nrm((T_HID, T_HID)),
        v_w=nrm((T_HID, T_HID)), o_w=nrm((T_HID, T_HID)),
        gate_w=nrm((T_HID, T_MLP)), up_w=nrm((T_HID, T_MLP)),
        down_w=nrm((T_MLP, T_HID)),
    ) for _ in range(T_LAYERS)]
    return p


def rope_tables(seq_len, head_dim):
    inv = 1.0 / (ROPE_THETA ** (jnp.arange(0, head_dim, 2, dtype=jnp.float32)
                                / head_dim))
    t = jnp.arange(seq_len, dtype=jnp.float32)
    freqs = jnp.outer(t, inv)
    emb = jnp.concatenate([freqs, freqs], axis=-1)
    return jnp.cos(emb), jnp.sin(emb)


def pack_params(p):
    """Repack standard per-layer weights into the fused / stacked / bf16 layout
    used by the kernels (heads split along a leading axis, attention scale
    folded into Q, per-layer stacking for the layer-grid axis)."""
    bf = jnp.bfloat16
    pk = {}

    # ---- vision tower ----
    vl = p["vlayers"][:V_USED_LAYERS]
    v_scale = 1.0 / (V_HEAD_DIM ** 0.5)

    def v_heads_in(w):                       # (D, D) -> (H, D, Dh)
        return w.reshape(V_HID, V_HEADS, V_HEAD_DIM).transpose(1, 0, 2)

    def v_bias_heads(b):                     # (1, D) -> (H, 1, Dh)
        return b.reshape(V_HEADS, 1, V_HEAD_DIM)

    pk["v_pe_w"] = p["patch_embed_w"].astype(bf)
    pk["v_cls"] = jnp.concatenate(
        [p["cls"], jnp.zeros((NUM_PATCHES, V_HID), jnp.float32)], axis=0)
    pk["v_pos"] = p["vpos"]
    pk["v_pre_w"], pk["v_pre_b"] = p["pre_ln_w"], p["pre_ln_b"]
    pk["v_ln1_w"] = jnp.stack([l["ln1_w"] for l in vl])
    pk["v_ln1_b"] = jnp.stack([l["ln1_b"] for l in vl])
    pk["v_ln2_w"] = jnp.stack([l["ln2_w"] for l in vl])
    pk["v_ln2_b"] = jnp.stack([l["ln2_b"] for l in vl])
    pk["v_wqkv"] = jnp.stack([
        jnp.concatenate([v_heads_in(l["q_w"] * v_scale),
                         v_heads_in(l["k_w"]),
                         v_heads_in(l["v_w"])], axis=0) for l in vl]).astype(bf)
    pk["v_bqkv"] = jnp.stack([
        jnp.concatenate([v_bias_heads(l["q_b"] * v_scale),
                         v_bias_heads(l["k_b"]),
                         v_bias_heads(l["v_b"])], axis=0) for l in vl])
    pk["v_wo"] = jnp.stack(
        [l["o_w"].reshape(V_HEADS, V_HEAD_DIM, V_HID) for l in vl]).astype(bf)
    pk["v_ob"] = jnp.stack([l["o_b"] for l in vl])
    pk["v_fc1_w"] = jnp.stack([l["fc1_w"] for l in vl]).astype(bf)
    pk["v_fc1_b"] = jnp.stack([l["fc1_b"] for l in vl])
    pk["v_fc2_w"] = jnp.stack([l["fc2_w"] for l in vl]).astype(bf)
    pk["v_fc2_b"] = jnp.stack([l["fc2_b"] for l in vl])
    sel = jnp.zeros((NUM_PATCHES, 1 + NUM_PATCHES), jnp.float32)
    pk["v_sel"] = sel.at[jnp.arange(NUM_PATCHES),
                         jnp.arange(NUM_PATCHES) + 1].set(1.0)
    pk["v_p1_w"] = p["proj1_w"].astype(bf)
    pk["v_p1_b"] = p["proj1_b"]
    pk["v_p2_w"] = p["proj2_w"].astype(bf)
    pk["v_p2_b"] = p["proj2_b"]

    # ---- text decoder ----
    tl = p["tlayers"]
    t_scale = 1.0 / (T_HEAD_DIM ** 0.5)

    def t_heads_in(w):                       # (D, D) -> (H, D, Dh)
        return w.reshape(T_HID, T_HEADS, T_HEAD_DIM).transpose(1, 0, 2)

    pk["t_embed"] = p["embed"]
    pk["t_in_norm"] = jnp.stack([l["in_norm_w"] for l in tl])
    pk["t_post_norm"] = jnp.stack([l["post_norm_w"] for l in tl])
    pk["t_wqkv"] = jnp.stack([
        jnp.concatenate([t_heads_in(l["q_w"] * t_scale),
                         t_heads_in(l["k_w"]),
                         t_heads_in(l["v_w"])], axis=0) for l in tl]).astype(bf)
    pk["t_wo"] = jnp.stack(
        [l["o_w"].reshape(T_HEADS, T_HEAD_DIM, T_HID) for l in tl]).astype(bf)
    pk["t_w_gate_up"] = jnp.stack([
        jnp.concatenate([l["gate_w"], l["up_w"]], axis=1) for l in tl]).astype(bf)
    pk["t_w_down"] = jnp.stack([l["down_w"] for l in tl]).astype(bf)
    pk["t_final_norm"] = p["final_norm_w"]
    pk["t_lm_head"] = p["lm_head_w"].astype(bf)

    # ---- static decoder-side tables (RoPE, rotate-half matrix, causal mask) ----
    S = SEQ_TOTAL
    cos, sin = rope_tables(S, T_HEAD_DIM)
    pk["t_cos"], pk["t_sin"] = cos, sin
    half = T_HEAD_DIM // 2
    rot = jnp.zeros((T_HEAD_DIM, T_HEAD_DIM), jnp.float32)
    rot = rot.at[jnp.arange(half) + half, jnp.arange(half)].set(-1.0)
    rot = rot.at[jnp.arange(half), jnp.arange(half) + half].set(1.0)
    pk["t_rot"] = rot
    # scores stay f32, so an additive -1e9 mask is safe.
    pk["t_mask"] = jnp.where(
        jnp.arange(S)[:, None] >= jnp.arange(S)[None, :], 0.0, -1e9
    ).astype(jnp.float32)
    return pk


# ----------------------------- greedy generation -----------------------------
@jax.jit
def _decode_loop(pk, img_tokens, ids, prompt_len):
    """Static-shaped greedy decode: padded token buffer, causal mask, one-hot
    last-position logits, on-device argmax, lax.fori_loop over steps."""
    S = SEQ_TOTAL

    def step(i, ids):
        txt = jnp.take(pk["t_embed"], ids, axis=0)             # (TXT_LEN, T_HID)
        h0 = jnp.concatenate([img_tokens, txt], axis=0)        # (S, T_HID)
        pos = NUM_PATCHES + prompt_len + i - 1                 # last valid index
        onehot = (jnp.arange(S)[None, :] == pos).astype(jnp.float32)
        logits = _decoder_call(pk, h0, onehot)                 # (1, VOCAB)
        nxt = jnp.argmax(logits[0]).astype(jnp.int32)
        return ids.at[prompt_len + i].set(nxt)

    return jax.lax.fori_loop(0, MAX_NEW_TOKENS, step, ids)


def generate(pk, img_tokens, prompt_ids):
    plen = len(prompt_ids)
    assert plen <= MAX_PROMPT_LEN
    ids = jnp.zeros((TXT_LEN,), jnp.int32).at[:plen].set(
        jnp.asarray(prompt_ids, jnp.int32))
    ids = _decode_loop(pk, img_tokens, ids, jnp.asarray(plen, jnp.int32))
    ids = jax.device_get(ids)
    return [int(t) for t in ids[plen:plen + MAX_NEW_TOKENS]]


def tokenize(text):
    # TODO(synk): real module uses HF AutoProcessor + chat template; no Pallas
    # equivalent — toy byte-level tokenizer with a BOS token.
    return [1] + [(ord(c) % (VOCAB - 2)) + 2 for c in text]


def llava_module_forward(pk, image, queries):
    # TODO(synk): real module re-runs the processor per query; the pixel inputs
    # are identical every time, so the vision tower + projector run once here.
    img_tokens = encode_image(pk, image)
    answers = []
    for q in queries:
        gen = generate(pk, img_tokens, tokenize(q))
        # TODO(synk): no detokenizer / skip_special_tokens — pseudo-decoded string.
        answers.append(" ".join(f"<tok{t}>" for t in gen))
    return answers


# ----------------------------- main -----------------------------
if __name__ == "__main__":
    key = jax.random.PRNGKey(0)
    pkey, ikey = jax.random.split(key)
    params = init_params(pkey)
    packed = pack_params(params)
    image = jax.random.normal(ikey, (1, IMG_C, IMG_H, IMG_W), jnp.float32)
    queries = ["What is in the image?", "Describe the colors."]

    answers = llava_module_forward(packed, image, queries)

    # block on a kernel-produced result
    img_tokens = encode_image(packed, image)
    jax.block_until_ready(img_tokens)

    assert len(answers) == len(queries) and all(len(a) > 0 for a in answers)
    print("KERNEL_OK")
</pallas_src>

<mosaic_0001>
module attributes {stable_mosaic.version = 11 : i64} {
  func.func @_vision_tower_kernel(%arg0: i32, %arg1: memref<5x192xf32, #tpu.memory_space<vmem>>, %arg2: memref<192x32xbf16, #tpu.memory_space<vmem>>, %arg3: memref<5x32xf32, #tpu.memory_space<vmem>>, %arg4: memref<5x32xf32, #tpu.memory_space<vmem>>, %arg5: memref<1x32xf32, #tpu.memory_space<vmem>>, %arg6: memref<1x32xf32, #tpu.memory_space<vmem>>, %arg7: memref<1x1x32xf32, #tpu.memory_space<vmem>>, %arg8: memref<1x1x32xf32, #tpu.memory_space<vmem>>, %arg9: memref<1x1x32xf32, #tpu.memory_space<vmem>>, %arg10: memref<1x1x32xf32, #tpu.memory_space<vmem>>, %arg11: memref<1x12x32x8xbf16, #tpu.memory_space<vmem>>, %arg12: memref<1x12x1x8xf32, #tpu.memory_space<vmem>>, %arg13: memref<1x4x8x32xbf16, #tpu.memory_space<vmem>>, %arg14: memref<1x1x32xf32, #tpu.memory_space<vmem>>, %arg15: memref<1x32x64xbf16, #tpu.memory_space<vmem>>, %arg16: memref<1x1x64xf32, #tpu.memory_space<vmem>>, %arg17: memref<1x64x32xbf16, #tpu.memory_space<vmem>>, %arg18: memref<1x1x32xf32, #tpu.memory_space<vmem>>, %arg19: memref<4x5xf32, #tpu.memory_space<vmem>>, %arg20: memref<32x64xbf16, #tpu.memory_space<vmem>>, %arg21: memref<1x64xf32, #tpu.memory_space<vmem>>, %arg22: memref<64x64xbf16, #tpu.memory_space<vmem>>, %arg23: memref<1x64xf32, #tpu.memory_space<vmem>>, %arg24: memref<4x64xf32, #tpu.memory_space<vmem>>, %arg25: memref<5x32xf32, #tpu.memory_space<vmem>>) attributes {dimension_semantics = [#tpu.dimension_semantics<arbitrary>], iteration_bounds = array<i64: 1>, scalar_prefetch = 0 : i64, scratch_operands = 1 : i64, tpu.core_type = #tpu.core_type<tc>, window_params = [{pipeline_mode = #tpu.pipeline_mode<synchronous>, transform_indices = @transform_0, window_bounds = array<i64: 5, 192>}, {pipeline_mode = #tpu.pipeline_mode<synchronous>, transform_indices = @transform_1, window_bounds = array<i64: 192, 32>}, {pipeline_mode = #tpu.pipeline_mode<synchronous>, transform_indices = @transform_2, window_bounds = array<i64: 5, 32>}, {pipeline_mode = #tpu.pipeline_mode<synchronous>, transform_indices = @transform_3, window_bounds = array<i64: 5, 32>}, {pipeline_mode = #tpu.pipeline_mode<synchronous>, transform_indices = @transform_4, window_bounds = array<i64: 1, 32>}, {pipeline_mode = #tpu.pipeline_mode<synchronous>, transform_indices = @transform_5, window_bounds = array<i64: 1, 32>}, {transform_indices = @transform_6, window_bounds = array<i64: 1, 1, 32>}, {transform_indices = @transform_7, window_bounds = array<i64: 1, 1, 32>}, {transform_indices = @transform_8, window_bounds = array<i64: 1, 1, 32>}, {transform_indices = @transform_9, window_bounds = array<i64: 1, 1, 32>}, {transform_indices = @transform_10, window_bounds = array<i64: 1, 12, 32, 8>}, {transform_indices = @transform_11, window_bounds = array<i64: 1, 12, 1, 8>}, {transform_indices = @transform_12, window_bounds = array<i64: 1, 4, 8, 32>}, {transform_indices = @transform_13, window_bounds = array<i64: 1, 1, 32>}, {transform_indices = @transform_14, window_bounds = array<i64: 1, 32, 64>}, {transform_indices = @transform_15, window_bounds = array<i64: 1, 1, 64>}, {transform_indices = @transform_16, window_bounds = array<i64: 1, 64, 32>}, {transform_indices = @transform_17, window_bounds = array<i64: 1, 1, 32>}, {pipeline_mode = #tpu.pipeline_mode<synchronous>, transform_indices = @transform_18, window_bounds = array<i64: 4, 5>}, {pipeline_mode = #tpu.pipeline_mode<synchronous>, transform_indices = @transform_19, window_bounds = array<i64: 32, 64>}, {pipeline_mode = #tpu.pipeline_mode<synchronous>, transform_indices = @transform_20, window_bounds = array<i64: 1, 64>}, {pipeline_mode = #tpu.pipeline_mode<synchronous>, transform_indices = @transform_21, window_bounds = array<i64: 64, 64>}, {pipeline_mode = #tpu.pipeline_mode<synchronous>, transform_indices = @transform_22, window_bounds = array<i64: 1, 64>}, {pipeline_mode = #tpu.pipeline_mode<synchronous>, transform_indices = @transform_23, window_bounds = array<i64: 4, 64>}]} {
    %c0_i32 = arith.constant 0 : i32
    %0 = arith.cmpi eq, %arg0, %c0_i32 : i32
    %1 = arith.extui %0 : i1 to i32
    %c0_i32_0 = arith.constant 0 : i32
    %2 = arith.cmpi ne, %1, %c0_i32_0 : i32
    scf.if %2 {
      %c0_179 = arith.constant 0 : index
      %c0_180 = arith.constant 0 : index
      %258 = vector.load %arg1[%c0_179, %c0_180] : memref<5x192xf32, #tpu.memory_space<vmem>>, vector<5x192xf32>
      %259 = arith.truncf %258 : vector<5x192xf32> to vector<5x192xbf16>
      %c0_181 = arith.constant 0 : index
      %c0_182 = arith.constant 0 : index
      %260 = vector.load %arg2[%c0_181, %c0_182] : memref<192x32xbf16, #tpu.memory_space<vmem>>, vector<192x32xbf16>
      %cst_183 = arith.constant dense<0.000000e+00> : vector<5x32xf32>
      %261 = tpu.matmul %259, %260, %cst_183 {dimension_numbers = #tpu.dot_dimension_numbers<[1], [0], [0], [1], [0, 0, 1, 1], [], []>} : vector<5x192xbf16>, vector<192x32xbf16>, vector<5x32xf32> -> vector<5x32xf32>
      %c0_184 = arith.constant 0 : index
      %c0_185 = arith.constant 0 : index
      %262 = vector.load %arg3[%c0_184, %c0_185] : memref<5x32xf32, #tpu.memory_space<vmem>>, vector<5x32xf32>
      %263 = arith.addf %261, %262 : vector<5x32xf32>
      %c0_186 = arith.constant 0 : index
      %c0_187 = arith.constant 0 : index
      %264 = vector.load %arg4[%c0_186, %c0_187] : memref<5x32xf32, #tpu.memory_space<vmem>>, vector<5x32xf32>
      %265 = arith.addf %263, %264 : vector<5x32xf32>
      %c0_188 = arith.constant 0 : index
      %c0_189 = arith.constant 0 : index
      %266 = vector.load %arg5[%c0_188, %c0_189] : memref<1x32xf32, #tpu.memory_space<vmem>>, vector<1x32xf32>
      %c0_190 = arith.constant 0 : index
      %c0_191 = arith.constant 0 : index
      %267 = vector.load %arg6[%c0_190, %c0_191] : memref<1x32xf32, #tpu.memory_space<vmem>>, vector<1x32xf32>
      %cst_192 = arith.constant dense<0.000000e+00> : vector<5xf32>
      %268 = vector.multi_reduction <add>, %265, %cst_192 [1] : vector<5x32xf32> to vector<5xf32>
      %269 = vector.shape_cast %268 : vector<5xf32> to vector<5x1xf32>
      %cst_193 = arith.constant 3.200000e+01 : f32
      %270 = vector.broadcast %cst_193 : f32 to vector<5x1xf32>
      %271 = arith.divf %269, %270 : vector<5x1xf32>
      %272 = vector.broadcast %271 : vector<5x1xf32> to vector<5x32xf32>
      %273 = arith.subf %265, %272 : vector<5x32xf32>
      %274 = arith.mulf %273, %273 : vector<5x32xf32>
      %cst_194 = arith.constant dense<0.000000e+00> : vector<5xf32>
      %275 = vector.multi_reduction <add>, %274, %cst_194 [1] : vector<5x32xf32> to vector<5xf32>
      %276 = vector.shape_cast %275 : vector<5xf32> to vector<5x1xf32>
      %cst_195 = arith.constant 3.200000e+01 : f32
      %277 = vector.broadcast %cst_195 : f32 to vector<5x1xf32>
      %278 = arith.divf %276, %277 : vector<5x1xf32>
      %279 = vector.broadcast %271 : vector<5x1xf32> to vector<5x32xf32>
      %280 = arith.subf %265, %279 : vector<5x32xf32>
      %cst_196 = arith.constant 9.99999974E-6 : f32
      %281 = vector.broadcast %cst_196 : f32 to vector<5x1xf32>
      %282 = arith.addf %278, %281 : vector<5x1xf32>
      %283 = math.rsqrt %282 : vector<5x1xf32>
      %284 = vector.broadcast %283 : vector<5x1xf32> to vector<5x32xf32>
      %285 = arith.mulf %280, %284 : vector<5x32xf32>
      %286 = vector.broadcast %266 : vector<1x32xf32> to vector<5x32xf32>
      %287 = arith.mulf %285, %286 : vector<5x32xf32>
      %288 = vector.broadcast %267 : vector<1x32xf32> to vector<5x32xf32>
      %289 = arith.addf %287, %288 : vector<5x32xf32>
      %c0_197 = arith.constant 0 : index
      %c0_198 = arith.constant 0 : index
      %290 = vector.load %arg25[%c0_197, %c0_198] : memref<5x32xf32, #tpu.memory_space<vmem>>, vector<5x32xf32>
      tpu.vector_store %arg25[%c0_197, %c0_198], %289 {strides = array<i32>} : memref<5x32xf32, #tpu.memory_space<vmem>>, vector<5x32xf32>,
    } else {
    }
    %c0 = arith.constant 0 : index
    %c0_1 = arith.constant 0 : index
    %3 = vector.load %arg25[%c0, %c0_1] : memref<5x32xf32, #tpu.memory_space<vmem>>, vector<5x32xf32>
    %c0_2 = arith.constant 0 : index
    %c0_3 = arith.constant 0 : index
    %c0_4 = arith.constant 0 : index
    %4 = vector.load %arg7[%c0_2, %c0_3, %c0_4] : memref<1x1x32xf32, #tpu.memory_space<vmem>>, vector<1x1x32xf32>
    %5 = vector.shape_cast %4 : vector<1x1x32xf32> to vector<1x32xf32>
    %c0_5 = arith.constant 0 : index
    %c0_6 = arith.constant 0 : index
    %c0_7 = arith.constant 0 : index
    %6 = vector.load %arg8[%c0_5, %c0_6, %c0_7] : memref<1x1x32xf32, #tpu.memory_space<vmem>>, vector<1x1x32xf32>
    %7 = vector.shape_cast %6 : vector<1x1x32xf32> to vector<1x32xf32>
    %cst = arith.constant dense<0.000000e+00> : vector<5xf32>
    %8 = vector.multi_reduction <add>, %3, %cst [1] : vector<5x32xf32> to vector<5xf32>
    %9 = vector.shape_cast %8 : vector<5xf32> to vector<5x1xf32>
    %cst_8 = arith.constant 3.200000e+01 : f32
    %10 = vector.broadcast %cst_8 : f32 to vector<5x1xf32>
    %11 = arith.divf %9, %10 : vector<5x1xf32>
    %12 = vector.broadcast %11 : vector<5x1xf32> to vector<5x32xf32>
    %13 = arith.subf %3, %12 : vector<5x32xf32>
    %14 = arith.mulf %13, %13 : vector<5x32xf32>
    %cst_9 = arith.constant dense<0.000000e+00> : vector<5xf32>
    %15 = vector.multi_reduction <add>, %14, %cst_9 [1] : vector<5x32xf32> to vector<5xf32>
    %16 = vector.shape_cast %15 : vector<5xf32> to vector<5x1xf32>
    %cst_10 = arith.constant 3.200000e+01 : f32
    %17 = vector.broadcast %cst_10 : f32 to vector<5x1xf32>
    %18 = arith.divf %16, %17 : vector<5x1xf32>
    %19 = vector.broadcast %11 : vector<5x1xf32> to vector<5x32xf32>
    %20 = arith.subf %3, %19 : vector<5x32xf32>
    %cst_11 = arith.constant 9.99999974E-6 : f32
    %21 = vector.broadcast %cst_11 : f32 to vector<5x1xf32>
    %22 = arith.addf %18, %21 : vector<5x1xf32>
    %23 = math.rsqrt %22 : vector<5x1xf32>
    %24 = vector.broadcast %23 : vector<5x1xf32> to vector<5x32xf32>
    %25 = arith.mulf %20, %24 : vector<5x32xf32>
    %26 = vector.broadcast %5 : vector<1x32xf32> to vector<5x32xf32>
    %27 = arith.mulf %25, %26 : vector<5x32xf32>
    %28 = vector.broadcast %7 : vector<1x32xf32> to vector<5x32xf32>
    %29 = arith.addf %27, %28 : vector<5x32xf32>
    %30 = arith.truncf %29 : vector<5x32xf32> to vector<5x32xbf16>
    %c0_12 = arith.constant 0 : index
    %c0_13 = arith.constant 0 : index
    %c0_14 = arith.constant 0 : index
    %c0_15 = arith.constant 0 : index
    %31 = vector.load %arg11[%c0_12, %c0_13, %c0_14, %c0_15] : memref<1x12x32x8xbf16, #tpu.memory_space<vmem>>, vector<1x1x32x8xbf16>
    %32 = vector.shape_cast %31 : vector<1x1x32x8xbf16> to vector<32x8xbf16>
    %cst_16 = arith.constant dense<0.000000e+00> : vector<5x8xf32>
    %33 = tpu.matmul %30, %32, %cst_16 {dimension_numbers = #tpu.dot_dimension_numbers<[1], [0], [0], [1], [0, 0, 1, 1], [], []>} : vector<5x32xbf16>, vector<32x8xbf16>, vector<5x8xf32> -> vector<5x8xf32>
    %c0_17 = arith.constant 0 : index
    %c0_18 = arith.constant 0 : index
    %c0_19 = arith.constant 0 : index
    %c0_20 = arith.constant 0 : index
    %34 = vector.load %arg12[%c0_17, %c0_18, %c0_19, %c0_20] : memref<1x12x1x8xf32, #tpu.memory_space<vmem>>, vector<1x1x1x8xf32>
    %35 = vector.shape_cast %34 : vector<1x1x1x8xf32> to vector<1x8xf32>
    %36 = vector.broadcast %35 : vector<1x8xf32> to vector<5x8xf32>
    %37 = arith.addf %33, %36 : vector<5x8xf32>
    %c0_21 = arith.constant 0 : index
    %c4 = arith.constant 4 : index
    %c0_22 = arith.constant 0 : index
    %c0_23 = arith.constant 0 : index
    %38 = vector.load %arg11[%c0_21, %c4, %c0_22, %c0_23] : memref<1x12x32x8xbf16, #tpu.memory_space<vmem>>, vector<1x1x32x8xbf16>
    %39 = vector.shape_cast %38 : vector<1x1x32x8xbf16> to vector<32x8xbf16>
    %cst_24 = arith.constant dense<0.000000e+00> : vector<5x8xf32>
    %40 = tpu.matmul %30, %39, %cst_24 {dimension_numbers = #tpu.dot_dimension_numbers<[1], [0], [0], [1], [0, 0, 1, 1], [], []>} : vector<5x32xbf16>, vector<32x8xbf16>, vector<5x8xf32> -> vector<5x8xf32>
    %c0_25 = arith.constant 0 : index
    %c4_26 = arith.constant 4 : index
    %c0_27 = arith.constant 0 : index
    %c0_28 = arith.constant 0 : index
    %41 = vector.load %arg12[%c0_25, %c4_26, %c0_27, %c0_28] : memref<1x12x1x8xf32, #tpu.memory_space<vmem>>, vector<1x1x1x8xf32>
    %42 = vector.shape_cast %41 : vector<1x1x1x8xf32> to vector<1x8xf32>
    %43 = vector.broadcast %42 : vector<1x8xf32> to vector<5x8xf32>
    %44 = arith.addf %40, %43 : vector<5x8xf32>
    %c0_29 = arith.constant 0 : index
    %c8 = arith.constant 8 : index
    %c0_30 = arith.constant 0 : index
    %c0_31 = arith.constant 0 : index
    %45 = vector.load %arg11[%c0_29, %c8, %c0_30, %c0_31] : memref<1x12x32x8xbf16, #tpu.memory_space<vmem>>, vector<1x1x32x8xbf16>
    %46 = vector.shape_cast %45 : vector<1x1x32x8xbf16> to vector<32x8xbf16>
    %cst_32 = arith.constant dense<0.000000e+00> : vector<5x8xf32>
    %47 = tpu.matmul %30, %46, %cst_32 {dimension_numbers = #tpu.dot_dimension_numbers<[1], [0], [0], [1], [0, 0, 1, 1], [], []>} : vector<5x32xbf16>, vector<32x8xbf16>, vector<5x8xf32> -> vector<5x8xf32>
    %c0_33 = arith.constant 0 : index
    %c8_34 = arith.constant 8 : index
    %c0_35 = arith.constant 0 : index
    %c0_36 = arith.constant 0 : index
    %48 = vector.load %arg12[%c0_33, %c8_34, %c0_35, %c0_36] : memref<1x12x1x8xf32, #tpu.memory_space<vmem>>, vector<1x1x1x8xf32>
    %49 = vector.shape_cast %48 : vector<1x1x1x8xf32> to vector<1x8xf32>
    %50 = vector.broadcast %49 : vector<1x8xf32> to vector<5x8xf32>
    %51 = arith.addf %47, %50 : vector<5x8xf32>
    %52 = arith.truncf %37 : vector<5x8xf32> to vector<5x8xbf16>
    %53 = arith.truncf %44 : vector<5x8xf32> to vector<5x8xbf16>
    %cst_37 = arith.constant dense<0.000000e+00> : vector<5x5xf32>
    %54 = tpu.matmul %52, %53, %cst_37 {dimension_numbers = #tpu.dot_dimension_numbers<[1], [1], [0], [0], [0, 0, 1, 0], [], []>} : vector<5x8xbf16>, vector<5x8xbf16>, vector<5x5xf32> -> vector<5x5xf32>
    %cst_38 = arith.constant dense<0xFF800000> : vector<5xf32>
    %55 = vector.multi_reduction <maximumf>, %54, %cst_38 [1] : vector<5x5xf32> to vector<5xf32>
    %56 = vector.shape_cast %55 : vector<5xf32> to vector<5x1xf32>
    %57 = vector.broadcast %56 : vector<5x1xf32> to vector<5x5xf32>
    %58 = arith.subf %54, %57 : vector<5x5xf32>
    %59 = math.exp %58 : vector<5x5xf32>
    %cst_39 = arith.constant dense<0.000000e+00> : vector<5xf32>
    %60 = vector.multi_reduction <add>, %59, %cst_39 [1] : vector<5x5xf32> to vector<5xf32>
    %61 = vector.shape_cast %60 : vector<5xf32> to vector<5x1xf32>
    %62 = tpu.reciprocal %61 {approx = true} : vector<5x1xf32> -> vector<5x1xf32>
    %63 = vector.broadcast %62 : vector<5x1xf32> to vector<5x5xf32>
    %64 = arith.mulf %59, %63 : vector<5x5xf32>
    %65 = arith.truncf %64 : vector<5x5xf32> to vector<5x5xbf16>
    %66 = arith.truncf %51 : vector<5x8xf32> to vector<5x8xbf16>
    %cst_40 = arith.constant dense<0.000000e+00> : vector<5x8xf32>
    %67 = tpu.matmul %65, %66, %cst_40 {dimension_numbers = #tpu.dot_dimension_numbers<[1], [0], [0], [1], [0, 0, 1, 1], [], []>} : vector<5x5xbf16>, vector<5x8xbf16>, vector<5x8xf32> -> vector<5x8xf32>
    %68 = arith.truncf %67 : vector<5x8xf32> to vector<5x8xbf16>
    %c0_41 = arith.constant 0 : index
    %c0_42 = arith.constant 0 : index
    %c0_43 = arith.constant 0 : index
    %c0_44 = arith.constant 0 : index
    %69 = vector.load %arg13[%c0_41, %c0_42, %c0_43, %c0_44] : memref<1x4x8x32xbf16, #tpu.memory_space<vmem>>, vector<1x1x8x32xbf16>
    %70 = vector.shape_cast %69 : vector<1x1x8x32xbf16> to vector<8x32xbf16>
    %cst_45 = arith.constant dense<0.000000e+00> : vector<5x32xf32>
    %71 = tpu.matmul %68, %70, %cst_45 {dimension_numbers = #tpu.dot_dimension_numbers<[1], [0], [0], [1], [0, 0, 1, 1], [], []>} : vector<5x8xbf16>, vector<8x32xbf16>, vector<5x32xf32> -> vector<5x32xf32>
    %72 = arith.addf %3, %71 : vector<5x32xf32>
    %c0_46 = arith.constant 0 : index
    %c1 = arith.constant 1 : index
    %c0_47 = arith.constant 0 : index
    %c0_48 = arith.constant 0 : index
    %73 = vector.load %arg11[%c0_46, %c1, %c0_47, %c0_48] : memref<1x12x32x8xbf16, #tpu.memory_space<vmem>>, vector<1x1x32x8xbf16>
    %74 = vector.shape_cast %73 : vector<1x1x32x8xbf16> to vector<32x8xbf16>
    %cst_49 = arith.constant dense<0.000000e+00> : vector<5x8xf32>
    %75 = tpu.matmul %30, %74, %cst_49 {dimension_numbers = #tpu.dot_dimension_numbers<[1], [0], [0], [1], [0, 0, 1, 1], [], []>} : vector<5x32xbf16>, vector<32x8xbf16>, vector<5x8xf32> -> vector<5x8xf32>
    %c0_50 = arith.constant 0 : index
    %c1_51 = arith.constant 1 : index
    %c0_52 = arith.constant 0 : index
    %c0_53 = arith.constant 0 : index
    %76 = vector.load %arg12[%c0_50, %c1_51, %c0_52, %c0_53] : memref<1x12x1x8xf32, #tpu.memory_space<vmem>>, vector<1x1x1x8xf32>
    %77 = vector.shape_cast %76 : vector<1x1x1x8xf32> to vector<1x8xf32>
    %78 = vector.broadcast %77 : vector<1x8xf32> to vector<5x8xf32>
    %79 = arith.addf %75, %78 : vector<5x8xf32>
    %c0_54 = arith.constant 0 : index
    %c5 = arith.constant 5 : index
    %c0_55 = arith.constant 0 : index
    %c0_56 = arith.constant 0 : index
    %80 = vector.load %arg11[%c0_54, %c5, %c0_55, %c0_56] : memref<1x12x32x8xbf16, #tpu.memory_space<vmem>>, vector<1x1x32x8xbf16>
    %81 = vector.shape_cast %80 : vector<1x1x32x8xbf16> to vector<32x8xbf16>
    %cst_57 = arith.constant dense<0.000000e+00> : vector<5x8xf32>
    %82 = tpu.matmul %30, %81, %cst_57 {dimension_numbers = #tpu.dot_dimension_numbers<[1], [0], [0], [1], [0, 0, 1, 1], [], []>} : vector<5x32xbf16>, vector<32x8xbf16>, vector<5x8xf32> -> vector<5x8xf32>
    %c0_58 = arith.constant 0 : index
    %c5_59 = arith.constant 5 : index
    %c0_60 = arith.constant 0 : index
    %c0_61 = arith.constant 0 : index
    %83 = vector.load %arg12[%c0_58, %c5_59, %c0_60, %c0_61] : memref<1x12x1x8xf32, #tpu.memory_space<vmem>>, vector<1x1x1x8xf32>
    %84 = vector.shape_cast %83 : vector<1x1x1x8xf32> to vector<1x8xf32>
    %85 = vector.broadcast %84 : vector<1x8xf32> to vector<5x8xf32>
    %86 = arith.addf %82, %85 : vector<5x8xf32>
    %c0_62 = arith.constant 0 : index
    %c9 = arith.constant 9 : index
    %c0_63 = arith.constant 0 : index
    %c0_64 = arith.constant 0 : index
    %87 = vector.load %arg11[%c0_62, %c9, %c0_63, %c0_64] : memref<1x12x32x8xbf16, #tpu.memory_space<vmem>>, vector<1x1x32x8xbf16>
    %88 = vector.shape_cast %87 : vector<1x1x32x8xbf16> to vector<32x8xbf16>
    %cst_65 = arith.constant dense<0.000000e+00> : vector<5x8xf32>
    %89 = tpu.matmul %30, %88, %cst_65 {dimension_numbers = #tpu.dot_dimension_numbers<[1], [0], [0], [1], [0, 0, 1, 1], [], []>} : vector<5x32xbf16>, vector<32x8xbf16>, vector<5x8xf32> -> vector<5x8xf32>
    %c0_66 = arith.constant 0 : index
    %c9_67 = arith.constant 9 : index
    %c0_68 = arith.constant 0 : index
    %c0_69 = arith.constant 0 : index
    %90 = vector.load %arg12[%c0_66, %c9_67, %c0_68, %c0_69] : memref<1x12x1x8xf32, #tpu.memory_space<vmem>>, vector<1x1x1x8xf32>
    %91 = vector.shape_cast %90 : vector<1x1x1x8xf32> to vector<1x8xf32>
    %92 = vector.broadcast %91 : vector<1x8xf32> to vector<5x8xf32>
    %93 = arith.addf %89, %92 : vector<5x8xf32>
    %94 = arith.truncf %79 : vector<5x8xf32> to vector<5x8xbf16>
    %95 = arith.truncf %86 : vector<5x8xf32> to vector<5x8xbf16>
    %cst_70 = arith.constant dense<0.000000e+00> : vector<5x5xf32>
    %96 = tpu.matmul %94, %95, %cst_70 {dimension_numbers = #tpu.dot_dimension_numbers<[1], [1], [0], [0], [0, 0, 1, 0], [], []>} : vector<5x8xbf16>, vector<5x8xbf16>, vector<5x5xf32> -> vector<5x5xf32>
    %cst_71 = arith.constant dense<0xFF800000> : vector<5xf32>
    %97 = vector.multi_reduction <maximumf>, %96, %cst_71 [1] : vector<5x5xf32> to vector<5xf32>
    %98 = vector.shape_cast %97 : vector<5xf32> to vector<5x1xf32>
    %99 = vector.broadcast %98 : vector<5x1xf32> to vector<5x5xf32>
    %100 = arith.subf %96, %99 : vector<5x5xf32>
    %101 = math.exp %100 : vector<5x5xf32>
    %cst_72 = arith.constant dense<0.000000e+00> : vector<5xf32>
    %102 = vector.multi_reduction <add>, %101, %cst_72 [1] : vector<5x5xf32> to vector<5xf32>
    %103 = vector.shape_cast %102 : vector<5xf32> to vector<5x1xf32>
    %104 = tpu.reciprocal %103 {approx = true} : vector<5x1xf32> -> vector<5x1xf32>
    %105 = vector.broadcast %104 : vector<5x1xf32> to vector<5x5xf32>
    %106 = arith.mulf %101, %105 : vector<5x5xf32>
    %107 = arith.truncf %106 : vector<5x5xf32> to vector<5x5xbf16>
    %108 = arith.truncf %93 : vector<5x8xf32> to vector<5x8xbf16>
    %cst_73 = arith.constant dense<0.000000e+00> : vector<5x8xf32>
    %109 = tpu.matmul %107, %108, %cst_73 {dimension_numbers = #tpu.dot_dimension_numbers<[1], [0], [0], [1], [0, 0, 1, 1], [], []>} : vector<5x5xbf16>, vector<5x8xbf16>, vector<5x8xf32> -> vector<5x8xf32>
    %110 = arith.truncf %109 : vector<5x8xf32> to vector<5x8xbf16>
    %c0_74 = arith.constant 0 : index
    %c1_75 = arith.constant 1 : index
    %c0_76 = arith.constant 0 : index
    %c0_77 = arith.constant 0 : index
    %111 = vector.load %arg13[%c0_74, %c1_75, %c0_76, %c0_77] : memref<1x4x8x32xbf16, #tpu.memory_space<vmem>>, vector<1x1x8x32xbf16>
    %112 = vector.shape_cast %111 : vector<1x1x8x32xbf16> to vector<8x32xbf16>
    %cst_78 = arith.constant dense<0.000000e+00> : vector<5x32xf32>
    %113 = tpu.matmul %110, %112, %cst_78 {dimension_numbers = #tpu.dot_dimension_numbers<[1], [0], [0], [1], [0, 0, 1, 1], [], []>} : vector<5x8xbf16>, vector<8x32xbf16>, vector<5x32xf32> -> vector<5x32xf32>
    %114 = arith.addf %72, %113 : vector<5x32xf32>
    %c0_79 = arith.constant 0 : index
    %c2 = arith.constant 2 : index
    %c0_80 = arith.constant 0 : index
    %c0_81 = arith.constant 0 : index
    %115 = vector.load %arg11[%c0_79, %c2, %c0_80, %c0_81] : memref<1x12x32x8xbf16, #tpu.memory_space<vmem>>, vector<1x1x32x8xbf16>
    %116 = vector.shape_cast %115 : vector<1x1x32x8xbf16> to vector<32x8xbf16>
    %cst_82 = arith.constant dense<0.000000e+00> : vector<5x8xf32>
    %117 = tpu.matmul %30, %116, %cst_82 {dimension_numbers = #tpu.dot_dimension_numbers<[1], [0], [0], [1], [0, 0, 1, 1], [], []>} : vector<5x32xbf16>, vector<32x8xbf16>, vector<5x8xf32> -> vector<5x8xf32>
    %c0_83 = arith.constant 0 : index
    %c2_84 = arith.constant 2 : index
    %c0_85 = arith.constant 0 : index
    %c0_86 = arith.constant 0 : index
    %118 = vector.load %arg12[%c0_83, %c2_84, %c0_85, %c0_86] : memref<1x12x1x8xf32, #tpu.memory_space<vmem>>, vector<1x1x1x8xf32>
    %119 = vector.shape_cast %118 : vector<1x1x1x8xf32> to vector<1x8xf32>
    %120 = vector.broadcast %119 : vector<1x8xf32> to vector<5x8xf32>
    %121 = arith.addf %117, %120 : vector<5x8xf32>
    %c0_87 = arith.constant 0 : index
    %c6 = arith.constant 6 : index
    %c0_88 = arith.constant 0 : index
    %c0_89 = arith.constant 0 : index
    %122 = vector.load %arg11[%c0_87, %c6, %c0_88, %c0_89] : memref<1x12x32x8xbf16, #tpu.memory_space<vmem>>, vector<1x1x32x8xbf16>
    %123 = vector.shape_cast %122 : vector<1x1x32x8xbf16> to vector<32x8xbf16>
    %cst_90 = arith.constant dense<0.000000e+00> : vector<5x8xf32>
    %124 = tpu.matmul %30, %123, %cst_90 {dimension_numbers = #tpu.dot_dimension_numbers<[1], [0], [0], [1], [0, 0, 1, 1], [], []>} : vector<5x32xbf16>, vector<32x8xbf16>, vector<5x8xf32> -> vector<5x8xf32>
    %c0_91 = arith.constant 0 : index
    %c6_92 = arith.constant 6 : index
    %c0_93 = arith.constant 0 : index
    %c0_94 = arith.constant 0 : index
    %125 = vector.load %arg12[%c0_91, %c6_92, %c0_93, %c0_94] : memref<1x12x1x8xf32, #tpu.memory_space<vmem>>, vector<1x1x1x8xf32>
    %126 = vector.shape_cast %125 : vector<1x1x1x8xf32> to vector<1x8xf32>
    %127 = vector.broadcast %126 : vector<1x8xf32> to vector<5x8xf32>
    %128 = arith.addf %124, %127 : vector<5x8xf32>
    %c0_95 = arith.constant 0 : index
    %c10 = arith.constant 10 : index
    %c0_96 = arith.constant 0 : index
    %c0_97 = arith.constant 0 : index
    %129 = vector.load %arg11[%c0_95, %c10, %c0_96, %c0_97] : memref<1x12x32x8xbf16, #tpu.memory_space<vmem>>, vector<1x1x32x8xbf16>
    %130 = vector.shape_cast %129 : vector<1x1x32x8xbf16> to vector<32x8xbf16>
    %cst_98 = arith.constant dense<0.000000e+00> : vector<5x8xf32>
    %131 = tpu.matmul %30, %130, %cst_98 {dimension_numbers = #tpu.dot_dimension_numbers<[1], [0], [0], [1], [0, 0, 1, 1], [], []>} : vector<5x32xbf16>, vector<32x8xbf16>, vector<5x8xf32> -> vector<5x8xf32>
    %c0_99 = arith.constant 0 : index
    %c10_100 = arith.constant 10 : index
    %c0_101 = arith.constant 0 : index
    %c0_102 = arith.constant 0 : index
    %132 = vector.load %arg12[%c0_99, %c10_100, %c0_101, %c0_102] : memref<1x12x1x8xf32, #tpu.memory_space<vmem>>, vector<1x1x1x8xf32>
    %133 = vector.shape_cast %132 : vector<1x1x1x8xf32> to vector<1x8xf32>
    %134 = vector.broadcast %133 : vector<1x8xf32> to vector<5x8xf32>
    %135 = arith.addf %131, %134 : vector<5x8xf32>
    %136 = arith.truncf %121 : vector<5x8xf32> to vector<5x8xbf16>
    %137 = arith.truncf %128 : vector<5x8xf32> to vector<5x8xbf16>
    %cst_103 = arith.constant dense<0.000000e+00> : vector<5x5xf32>
    %138 = tpu.matmul %136, %137, %cst_103 {dimension_numbers = #tpu.dot_dimension_numbers<[1], [1], [0], [0], [0, 0, 1, 0], [], []>} : vector<5x8xbf16>, vector<5x8xbf16>, vector<5x5xf32> -> vector<5x5xf32>
    %cst_104 = arith.constant dense<0xFF800000> : vector<5xf32>
    %139 = vector.multi_reduction <maximumf>, %138, %cst_104 [1] : vector<5x5xf32> to vector<5xf32>
    %140 = vector.shape_cast %139 : vector<5xf32> to vector<5x1xf32>
    %141 = vector.broadcast %140 : vector<5x1xf32> to vector<5x5xf32>
    %142 = arith.subf %138, %141 : vector<5x5xf32>
    %143 = math.exp %142 : vector<5x5xf32>
    %cst_105 = arith.constant dense<0.000000e+00> : vector<5xf32>
    %144 = vector.multi_reduction <add>, %143, %cst_105 [1] : vector<5x5xf32> to vector<5xf32>
    %145 = vector.shape_cast %144 : vector<5xf32> to vector<5x1xf32>
    %146 = tpu.reciprocal %145 {approx = true} : vector<5x1xf32> -> vector<5x1xf32>
    %147 = vector.broadcast %146 : vector<5x1xf32> to vector<5x5xf32>
    %148 = arith.mulf %143, %147 : vector<5x5xf32>
    %149 = arith.truncf %148 : vector<5x5xf32> to vector<5x5xbf16>
    %150 = arith.truncf %135 : vector<5x8xf32> to vector<5x8xbf16>
    %cst_106 = arith.constant dense<0.000000e+00> : vector<5x8xf32>
    %151 = tpu.matmul %149, %150, %cst_106 {dimension_numbers = #tpu.dot_dimension_numbers<[1], [0], [0], [1], [0, 0, 1, 1], [], []>} : vector<5x5xbf16>, vector<5x8xbf16>, vector<5x8xf32> -> vector<5x8xf32>
    %152 = arith.truncf %151 : vector<5x8xf32> to vector<5x8xbf16>
    %c0_107 = arith.constant 0 : index
    %c2_108 = arith.constant 2 : index
    %c0_109 = arith.constant 0 : index
    %c0_110 = arith.constant 0 : index
    %153 = vector.load %arg13[%c0_107, %c2_108, %c0_109, %c0_110] : memref<1x4x8x32xbf16, #tpu.memory_space<vmem>>, vector<1x1x8x32xbf16>
    %154 = vector.shape_cast %153 : vector<1x1x8x32xbf16> to vector<8x32xbf16>
    %cst_111 = arith.constant dense<0.000000e+00> : vector<5x32xf32>
    %155 = tpu.matmul %152, %154, %cst_111 {dimension_numbers = #tpu.dot_dimension_numbers<[1], [0], [0], [1], [0, 0, 1, 1], [], []>} : vector<5x8xbf16>, vector<8x32xbf16>, vector<5x32xf32> -> vector<5x32xf32>
    %156 = arith.addf %114, %155 : vector<5x32xf32>
    %c0_112 = arith.constant 0 : index
    %c3 = arith.constant 3 : index
    %c0_113 = arith.constant 0 : index
    %c0_114 = arith.constant 0 : index
    %157 = vector.load %arg11[%c0_112, %c3, %c0_113, %c0_114] : memref<1x12x32x8xbf16, #tpu.memory_space<vmem>>, vector<1x1x32x8xbf16>
    %158 = vector.shape_cast %157 : vector<1x1x32x8xbf16> to vector<32x8xbf16>
    %cst_115 = arith.constant dense<0.000000e+00> : vector<5x8xf32>
    %159 = tpu.matmul %30, %158, %cst_115 {dimension_numbers = #tpu.dot_dimension_numbers<[1], [0], [0], [1], [0, 0, 1, 1], [], []>} : vector<5x32xbf16>, vector<32x8xbf16>, vector<5x8xf32> -> vector<5x8xf32>
    %c0_116 = arith.constant 0 : index
    %c3_117 = arith.constant 3 : index
    %c0_118 = arith.constant 0 : index
    %c0_119 = arith.constant 0 : index
    %160 = vector.load %arg12[%c0_116, %c3_117, %c0_118, %c0_119] : memref<1x12x1x8xf32, #tpu.memory_space<vmem>>, vector<1x1x1x8xf32>
    %161 = vector.shape_cast %160 : vector<1x1x1x8xf32> to vector<1x8xf32>
    %162 = vector.broadcast %161 : vector<1x8xf32> to vector<5x8xf32>
    %163 = arith.addf %159, %162 : vector<5x8xf32>
    %c0_120 = arith.constant 0 : index
    %c7 = arith.constant 7 : index
    %c0_121 = arith.constant 0 : index
    %c0_122 = arith.constant 0 : index
    %164 = vector.load %arg11[%c0_120, %c7, %c0_121, %c0_122] : memref<1x12x32x8xbf16, #tpu.memory_space<vmem>>, vector<1x1x32x8xbf16>
    %165 = vector.shape_cast %164 : vector<1x1x32x8xbf16> to vector<32x8xbf16>
    %cst_123 = arith.constant dense<0.000000e+00> : vector<5x8xf32>
    %166 = tpu.matmul %30, %165, %cst_123 {dimension_numbers = #tpu.dot_dimension_numbers<[1], [0], [0], [1], [0, 0, 1, 1], [], []>} : vector<5x32xbf16>, vector<32x8xbf16>, vector<5x8xf32> -> vector<5x8xf32>
    %c0_124 = arith.constant 0 : index
    %c7_125 = arith.constant 7 : index
    %c0_126 = arith.constant 0 : index
    %c0_127 = arith.constant 0 : index
    %167 = vector.load %arg12[%c0_124, %c7_125, %c0_126, %c0_127] : memref<1x12x1x8xf32, #tpu.memory_space<vmem>>, vector<1x1x1x8xf32>
    %168 = vector.shape_cast %167 : vector<1x1x1x8xf32> to vector<1x8xf32>
    %169 = vector.broadcast %168 : vector<1x8xf32> to vector<5x8xf32>
    %170 = arith.addf %166, %169 : vector<5x8xf32>
    %c0_128 = arith.constant 0 : index
    %c11 = arith.constant 11 : index
    %c0_129 = arith.constant 0 : index
    %c0_130 = arith.constant 0 : index
    %171 = vector.load %arg11[%c0_128, %c11, %c0_129, %c0_130] : memref<1x12x32x8xbf16, #tpu.memory_space<vmem>>, vector<1x1x32x8xbf16>
    %172 = vector.shape_cast %171 : vector<1x1x32x8xbf16> to vector<32x8xbf16>
    %cst_131 = arith.constant dense<0.000000e+00> : vector<5x8xf32>
    %173 = tpu.matmul %30, %172, %cst_131 {dimension_numbers = #tpu.dot_dimension_numbers<[1], [0], [0], [1], [0, 0, 1, 1], [], []>} : vector<5x32xbf16>, vector<32x8xbf16>, vector<5x8xf32> -> vector<5x8xf32>
    %c0_132 = arith.constant 0 : index
    %c11_133 = arith.constant 11 : index
    %c0_134 = arith.constant 0 : index
    %c0_135 = arith.constant 0 : index
    %174 = vector.load %arg12[%c0_132, %c11_133, %c0_134, %c0_135] : memref<1x12x1x8xf32, #tpu.memory_space<vmem>>, vector<1x1x1x8xf32>
    %175 = vector.shape_cast %174 : vector<1x1x1x8xf32> to vector<1x8xf32>
    %176 = vector.broadcast %175 : vector<1x8xf32> to vector<5x8xf32>
    %177 = arith.addf %173, %176 : vector<5x8xf32>
    %178 = arith.truncf %163 : vector<5x8xf32> to vector<5x8xbf16>
    %179 = arith.truncf %170 : vector<5x8xf32> to vector<5x8xbf16>
    %cst_136 = arith.constant dense<0.000000e+00> : vector<5x5xf32>
    %180 = tpu.matmul %178, %179, %cst_136 {dimension_numbers = #tpu.dot_dimension_numbers<[1], [1], [0], [0], [0, 0, 1, 0], [], []>} : vector<5x8xbf16>, vector<5x8xbf16>, vector<5x5xf32> -> vector<5x5xf32>
    %cst_137 = arith.constant dense<0xFF800000> : vector<5xf32>
    %181 = vector.multi_reduction <maximumf>, %180, %cst_137 [1] : vector<5x5xf32> to vector<5xf32>
    %182 = vector.shape_cast %181 : vector<5xf32> to vector<5x1xf32>
    %183 = vector.broadcast %182 : vector<5x1xf32> to vector<5x5xf32>
    %184 = arith.subf %180, %183 : vector<5x5xf32>
    %185 = math.exp %184 : vector<5x5xf32>
    %cst_138 = arith.constant dense<0.000000e+00> : vector<5xf32>
    %186 = vector.multi_reduction <add>, %185, %cst_138 [1] : vector<5x5xf32> to vector<5xf32>
    %187 = vector.shape_cast %186 : vector<5xf32> to vector<5x1xf32>
    %188 = tpu.reciprocal %187 {approx = true} : vector<5x1xf32> -> vector<5x1xf32>
    %189 = vector.broadcast %188 : vector<5x1xf32> to vector<5x5xf32>
    %190 = arith.mulf %185, %189 : vector<5x5xf32>
    %191 = arith.truncf %190 : vector<5x5xf32> to vector<5x5xbf16>
    %192 = arith.truncf %177 : vector<5x8xf32> to vector<5x8xbf16>
    %cst_139 = arith.constant dense<0.000000e+00> : vector<5x8xf32>
    %193 = tpu.matmul %191, %192, %cst_139 {dimension_numbers = #tpu.dot_dimension_numbers<[1], [0], [0], [1], [0, 0, 1, 1], [], []>} : vector<5x5xbf16>, vector<5x8xbf16>, vector<5x8xf32> -> vector<5x8xf32>
    %194 = arith.truncf %193 : vector<5x8xf32> to vector<5x8xbf16>
    %c0_140 = arith.constant 0 : index
    %c3_141 = arith.constant 3 : index
    %c0_142 = arith.constant 0 : index
    %c0_143 = arith.constant 0 : index
    %195 = vector.load %arg13[%c0_140, %c3_141, %c0_142, %c0_143] : memref<1x4x8x32xbf16, #tpu.memory_space<vmem>>, vector<1x1x8x32xbf16>
    %196 = vector.shape_cast %195 : vector<1x1x8x32xbf16> to vector<8x32xbf16>
    %cst_144 = arith.constant dense<0.000000e+00> : vector<5x32xf32>
    %197 = tpu.matmul %194, %196, %cst_144 {dimension_numbers = #tpu.dot_dimension_numbers<[1], [0], [0], [1], [0, 0, 1, 1], [], []>} : vector<5x8xbf16>, vector<8x32xbf16>, vector<5x32xf32> -> vector<5x32xf32>
    %198 = arith.addf %156, %197 : vector<5x32xf32>
    %c0_145 = arith.constant 0 : index
    %c0_146 = arith.constant 0 : index
    %c0_147 = arith.constant 0 : index
    %199 = vector.load %arg14[%c0_145, %c0_146, %c0_147] : memref<1x1x32xf32, #tpu.memory_space<vmem>>, vector<1x1x32xf32>
    %200 = vector.shape_cast %199 : vector<1x1x32xf32> to vector<1x32xf32>
    %201 = vector.broadcast %200 : vector<1x32xf32> to vector<5x32xf32>
    %202 = arith.addf %198, %201 : vector<5x32xf32>
    %c0_148 = arith.constant 0 : index
    %c0_149 = arith.constant 0 : index
    %c0_150 = arith.constant 0 : index
    %203 = vector.load %arg9[%c0_148, %c0_149, %c0_150] : memref<1x1x32xf32, #tpu.memory_space<vmem>>, vector<1x1x32xf32>
    %204 = vector.shape_cast %203 : vector<1x1x32xf32> to vector<1x32xf32>
    %c0_151 = arith.constant 0 : index
    %c0_152 = arith.constant 0 : index
    %c0_153 = arith.constant 0 : index
    %205 = vector.load %arg10[%c0_151, %c0_152, %c0_153] : memref<1x1x32xf32, #tpu.memory_space<vmem>>, vector<1x1x32xf32>
    %206 = vector.shape_cast %205 : vector<1x1x32xf32> to vector<1x32xf32>
    %cst_154 = arith.constant dense<0.000000e+00> : vector<5xf32>
    %207 = vector.multi_reduction <add>, %202, %cst_154 [1] : vector<5x32xf32> to vector<5xf32>
    %208 = vector.shape_cast %207 : vector<5xf32> to vector<5x1xf32>
    %cst_155 = arith.constant 3.200000e+01 : f32
    %209 = vector.broadcast %cst_155 : f32 to vector<5x1xf32>
    %210 = arith.divf %208, %209 : vector<5x1xf32>
    %211 = vector.broadcast %210 : vector<5x1xf32> to vector<5x32xf32>
    %212 = arith.subf %202, %211 : vector<5x32xf32>
    %213 = arith.mulf %212, %212 : vector<5x32xf32>
    %cst_156 = arith.constant dense<0.000000e+00> : vector<5xf32>
    %214 = vector.multi_reduction <add>, %213, %cst_156 [1] : vector<5x32xf32> to vector<5xf32>
    %215 = vector.shape_cast %214 : vector<5xf32> to vector<5x1xf32>
    %cst_157 = arith.constant 3.200000e+01 : f32
    %216 = vector.broadcast %cst_157 : f32 to vector<5x1xf32>
    %217 = arith.divf %215, %216 : vector<5x1xf32>
    %218 = vector.broadcast %210 : vector<5x1xf32> to vector<5x32xf32>
    %219 = arith.subf %202, %218 : vector<5x32xf32>
    %cst_158 = arith.constant 9.99999974E-6 : f32
    %220 = vector.broadcast %cst_158 : f32 to vector<5x1xf32>
    %221 = arith.addf %217, %220 : vector<5x1xf32>
    %222 = math.rsqrt %221 : vector<5x1xf32>
    %223 = vector.broadcast %222 : vector<5x1xf32> to vector<5x32xf32>
    %224 = arith.mulf %219, %223 : vector<5x32xf32>
    %225 = vector.broadcast %204 : vector<1x32xf32> to vector<5x32xf32>
    %226 = arith.mulf %224, %225 : vector<5x32xf32>
    %227 = vector.broadcast %206 : vector<1x32xf32> to vector<5x32xf32>
    %228 = arith.addf %226, %227 : vector<5x32xf32>
    %229 = arith.truncf %228 : vector<5x32xf32> to vector<5x32xbf16>
    %c0_159 = arith.constant 0 : index
    %c0_160 = arith.constant 0 : index
    %c0_161 = arith.constant 0 : index
    %230 = vector.load %arg15[%c0_159, %c0_160, %c0_161] : memref<1x32x64xbf16, #tpu.memory_space<vmem>>, vector<1x32x64xbf16>
    %231 = vector.shape_cast %230 : vector<1x32x64xbf16> to vector<32x64xbf16>
    %cst_162 = arith.constant dense<0.000000e+00> : vector<5x64xf32>
    %232 = tpu.matmul %229, %231, %cst_162 {dimension_numbers = #tpu.dot_dimension_numbers<[1], [0], [0], [1], [0, 0, 1, 1], [], []>} : vector<5x32xbf16>, vector<32x64xbf16>, vector<5x64xf32> -> vector<5x64xf32>
    %c0_163 = arith.constant 0 : index
    %c0_164 = arith.constant 0 : index
    %c0_165 = arith.constant 0 : index
    %233 = vector.load %arg16[%c0_163, %c0_164, %c0_165] : memref<1x1x64xf32, #tpu.memory_space<vmem>>, vector<1x1x64xf32>
    %234 = vector.shape_cast %233 : vector<1x1x64xf32> to vector<1x64xf32>
    %235 = vector.broadcast %234 : vector<1x64xf32> to vector<5x64xf32>
    %236 = arith.addf %232, %235 : vector<5x64xf32>
    %cst_166 = arith.constant 1.702000e+00 : f32
    %237 = vector.broadcast %cst_166 : f32 to vector<5x64xf32>
    %238 = arith.mulf %237, %236 : vector<5x64xf32>
    %239 = arith.negf %238 : vector<5x64xf32>
    %240 = math.exp %239 : vector<5x64xf32>
    %cst_167 = arith.constant 1.000000e+00 : f32
    %241 = vector.broadcast %cst_167 : f32 to vector<5x64xf32>
    %242 = arith.addf %241, %240 : vector<5x64xf32>
    %243 = arith.divf %241, %242 : vector<5x64xf32>
    %244 = arith.mulf %236, %243 : vector<5x64xf32>
    %245 = arith.truncf %244 : vector<5x64xf32> to vector<5x64xbf16>
    %c0_168 = arith.constant 0 : index
    %c0_169 = arith.constant 0 : index
    %c0_170 = arith.constant 0 : index
    %246 = vector.load %arg17[%c0_168, %c0_169, %c0_170] : memref<1x64x32xbf16, #tpu.memory_space<vmem>>, vector<1x64x32xbf16>
    %247 = vector.shape_cast %246 : vector<1x64x32xbf16> to vector<64x32xbf16>
    %cst_171 = arith.constant dense<0.000000e+00> : vector<5x32xf32>
    %248 = tpu.matmul %245, %247, %cst_171 {dimension_numbers = #tpu.dot_dimension_numbers<[1], [0], [0], [1], [0, 0, 1, 1], [], []>} : vector<5x64xbf16>, vector<64x32xbf16>, vector<5x32xf32> -> vector<5x32xf32>
    %249 = arith.addf %202, %248 : vector<5x32xf32>
    %c0_172 = arith.constant 0 : index
    %c0_173 = arith.constant 0 : index
    %c0_174 = arith.constant 0 : index
    %250 = vector.load %arg18[%c0_172, %c0_173, %c0_174] : memref<1x1x32xf32, #tpu.memory_space<vmem>>, vector<1x1x32xf32>
    %251 = vector.shape_cast %250 : vector<1x1x32xf32> to vector<1x32xf32>
    %252 = vector.broadcast %251 : vector<1x32xf32> to vector<5x32xf32>
    %253 = arith.addf %249, %252 : vector<5x32xf32>
    %c0_175 = arith.constant 0 : index
    %c0_176 = arith.constant 0 : index
    %254 = vector.load %arg25[%c0_175, %c0_176] : memref<5x32xf32, #tpu.memory_space<vmem>>, vector<5x32xf32>
    tpu.vector_store %arg25[%c0_175, %c0_176], %253 {strides = array<i32>} : memref<5x32xf32, #tpu.memory_space<vmem>>, vector<5x32xf32>,
    %c0_i32_177 = arith.constant 0 : i32
    %255 = arith.cmpi eq, %arg0, %c0_i32_177 : i32
    %256 = arith.extui %255 : i1 to i32
    %c0_i32_178 = arith.constant 0 : i32
    %257 = arith.cmpi ne, %256, %c0_i32_178 : i32
    scf.if %257 {
      %c0_179 = arith.constant 0 : index
      %c0_180 = arith.constant 0 : index
      %258 = vector.load %arg19[%c0_179, %c0_180] : memref<4x5xf32, #tpu.memory_space<vmem>>, vector<4x5xf32>
      %cst_181 = arith.constant dense<0.000000e+00> : vector<4x32xf32>
      %259 = tpu.matmul %258, %253, %cst_181 {dimension_numbers = #tpu.dot_dimension_numbers<[1], [0], [0], [1], [0, 0, 1, 1], [], []>} : vector<4x5xf32>, vector<5x32xf32>, vector<4x32xf32> -> vector<4x32xf32>
      %260 = arith.truncf %259 : vector<4x32xf32> to vector<4x32xbf16>
      %c0_182 = arith.constant 0 : index
      %c0_183 = arith.constant 0 : index
      %261 = vector.load %arg20[%c0_182, %c0_183] : memref<32x64xbf16, #tpu.memory_space<vmem>>, vector<32x64xbf16>
      %cst_184 = arith.constant dense<0.000000e+00> : vector<4x64xf32>
      %262 = tpu.matmul %260, %261, %cst_184 {dimension_numbers = #tpu.dot_dimension_numbers<[1], [0], [0], [1], [0, 0, 1, 1], [], []>} : vector<4x32xbf16>, vector<32x64xbf16>, vector<4x64xf32> -> vector<4x64xf32>
      %c0_185 = arith.constant 0 : index
      %c0_186 = arith.constant 0 : index
      %263 = vector.load %arg21[%c0_185, %c0_186] : memref<1x64xf32, #tpu.memory_space<vmem>>, vector<1x64xf32>
      %264 = vector.broadcast %263 : vector<1x64xf32> to vector<4x64xf32>
      %265 = arith.addf %262, %264 : vector<4x64xf32>
      %266 = arith.mulf %265, %265 : vector<4x64xf32>
      %267 = arith.mulf %265, %266 : vector<4x64xf32>
      %cst_187 = arith.constant 4.471500e-02 : f32
      %268 = vector.broadcast %cst_187 : f32 to vector<4x64xf32>
      %269 = arith.mulf %268, %267 : vector<4x64xf32>
      %270 = arith.addf %265, %269 : vector<4x64xf32>
      %cst_188 = arith.constant 0.797884583 : f32
      %271 = vector.broadcast %cst_188 : f32 to vector<4x64xf32>
      %272 = arith.mulf %271, %270 : vector<4x64xf32>
      %273 = math.tanh %272 : vector<4x64xf32>
      %cst_189 = arith.constant 1.000000e+00 : f32
      %274 = vector.broadcast %cst_189 : f32 to vector<4x64xf32>
      %275 = arith.addf %274, %273 : vector<4x64xf32>
      %cst_190 = arith.constant 5.000000e-01 : f32
      %276 = vector.broadcast %cst_190 : f32 to vector<4x64xf32>
      %277 = arith.mulf %276, %275 : vector<4x64xf32>
      %278 = arith.mulf %265, %277 : vector<4x64xf32>
      %279 = arith.truncf %278 : vector<4x64xf32> to vector<4x64xbf16>
      %c0_191 = arith.constant 0 : index
      %c0_192 = arith.constant 0 : index
      %280 = vector.load %arg22[%c0_191, %c0_192] : memref<64x64xbf16, #tpu.memory_space<vmem>>, vector<64x64xbf16>
      %cst_193 = arith.constant dense<0.000000e+00> : vector<4x64xf32>
      %281 = tpu.matmul %279, %280, %cst_193 {dimension_numbers = #tpu.dot_dimension_numbers<[1], [0], [0], [1], [0, 0, 1, 1], [], []>} : vector<4x64xbf16>, vector<64x64xbf16>, vector<4x64xf32> -> vector<4x64xf32>
      %c0_194 = arith.constant 0 : index
      %c0_195 = arith.constant 0 : index
      %282 = vector.load %arg23[%c0_194, %c0_195] : memref<1x64xf32, #tpu.memory_space<vmem>>, vector<1x64xf32>
      %283 = vector.broadcast %282 : vector<1x64xf32> to vector<4x64xf32>
      %284 = arith.addf %281, %283 : vector<4x64xf32>
      %c0_196 = arith.constant 0 : index
      %c0_197 = arith.constant 0 : index
      %285 = vector.load %arg24[%c0_196, %c0_197] : memref<4x64xf32, #tpu.memory_space<vmem>>, vector<4x64xf32>
      tpu.vector_store %arg24[%c0_196, %c0_197], %284 {strides = array<i32>} : memref<4x64xf32, #tpu.memory_space<vmem>>, vector<4x64xf32>,
    } else {
    }
    return
  }
  func.func @transform_0(%arg0: i32) -> (i32, i32) {
    %c0_i32 = arith.constant 0 : i32
    %c0_i32_0 = arith.constant 0 : i32
    %c0_i32_1 = arith.constant 0 : i32
    return %c0_i32, %c0_i32_0 : i32, i32
  }
  func.func @transform_1(%arg0: i32) -> (i32, i32) {
    %c0_i32 = arith.constant 0 : i32
    %c0_i32_0 = arith.constant 0 : i32
    %c0_i32_1 = arith.constant 0 : i32
    return %c0_i32, %c0_i32_0 : i32, i32
  }
  func.func @transform_2(%arg0: i32) -> (i32, i32) {
    %c0_i32 = arith.constant 0 : i32
    %c0_i32_0 = arith.constant 0 : i32
    %c0_i32_1 = arith.constant 0 : i32
    return %c0_i32, %c0_i32_0 : i32, i32
  }
  func.func @transform_3(%arg0: i32) -> (i32, i32) {
    %c0_i32 = arith.constant 0 : i32
    %c0_i32_0 = arith.constant 0 : i32
    %c0_i32_1 = arith.constant 0 : i32
    return %c0_i32, %c0_i32_0 : i32, i32
  }
  func.func @transform_4(%arg0: i32) -> (i32, i32) {
    %c0_i32 = arith.constant 0 : i32
    %c0_i32_0 = arith.constant 0 : i32
    %c0_i32_1 = arith.constant 0 : i32
    return %c0_i32, %c0_i32_0 : i32, i32
  }
  func.func @transform_5(%arg0: i32) -> (i32, i32) {
    %c0_i32 = arith.constant 0 : i32
    %c0_i32_0 = arith.constant 0 : i32
    %c0_i32_1 = arith.constant 0 : i32
    return %c0_i32, %c0_i32_0 : i32, i32
  }
  func.func @transform_6(%arg0: i32) -> (i32, i32, i32) {
    %c0_i32 = arith.constant 0 : i32
    %c0_i32_0 = arith.constant 0 : i32
    %c0_i32_1 = arith.constant 0 : i32
    return %arg0, %c0_i32, %c0_i32_0 : i32, i32, i32
  }
  func.func @transform_7(%arg0: i32) -> (i32, i32, i32) {
    %c0_i32 = arith.constant 0 : i32
    %c0_i32_0 = arith.constant 0 : i32
    %c0_i32_1 = arith.constant 0 : i32
    return %arg0, %c0_i32, %c0_i32_0 : i32, i32, i32
  }
  func.func @transform_8(%arg0: i32) -> (i32, i32, i32) {
    %c0_i32 = arith.constant 0 : i32
    %c0_i32_0 = arith.constant 0 : i32
    %c0_i32_1 = arith.constant 0 : i32
    return %arg0, %c0_i32, %c0_i32_0 : i32, i32, i32
  }
  func.func @transform_9(%arg0: i32) -> (i32, i32, i32) {
    %c0_i32 = arith.constant 0 : i32
    %c0_i32_0 = arith.constant 0 : i32
    %c0_i32_1 = arith.constant 0 : i32
    return %arg0, %c0_i32, %c0_i32_0 : i32, i32, i32
  }
  func.func @transform_10(%arg0: i32) -> (i32, i32, i32, i32) {
    %c0_i32 = arith.constant 0 : i32
    %c0_i32_0 = arith.constant 0 : i32
    %c0_i32_1 = arith.constant 0 : i32
    %c0_i32_2 = arith.constant 0 : i32
    return %arg0, %c0_i32, %c0_i32_0, %c0_i32_1 : i32, i32, i32, i32
  }
  func.func @transform_11(%arg0: i32) -> (i32, i32, i32, i32) {
    %c0_i32 = arith.constant 0 : i32
    %c0_i32_0 = arith.constant 0 : i32
    %c0_i32_1 = arith.constant 0 : i32
    %c0_i32_2 = arith.constant 0 : i32
    return %arg0, %c0_i32, %c0_i32_0, %c0_i32_1 : i32, i32, i32, i32
  }
  func.func @transform_12(%arg0: i32) -> (i32, i32, i32, i32) {
    %c0_i32 = arith.constant 0 : i32
    %c0_i32_0 = arith.constant 0 : i32
    %c0_i32_1 = arith.constant 0 : i32
    %c0_i32_2 = arith.constant 0 : i32
    return %arg0, %c0_i32, %c0_i32_0, %c0_i32_1 : i32, i32, i32, i32
  }
  func.func @transform_13(%arg0: i32) -> (i32, i32, i32) {
    %c0_i32 = arith.constant 0 : i32
    %c0_i32_0 = arith.constant 0 : i32
    %c0_i32_1 = arith.constant 0 : i32
    return %arg0, %c0_i32, %c0_i32_0 : i32, i32, i32
  }
  func.func @transform_14(%arg0: i32) -> (i32, i32, i32) {
    %c0_i32 = arith.constant 0 : i32
    %c0_i32_0 = arith.constant 0 : i32
    %c0_i32_1 = arith.constant 0 : i32
    return %arg0, %c0_i32, %c0_i32_0 : i32, i32, i32
  }
  func.func @transform_15(%arg0: i32) -> (i32, i32, i32) {
    %c0_i32 = arith.constant 0 : i32
    %c0_i32_0 = arith.constant 0 : i32
    %c0_i32_1 = arith.constant 0 : i32
    return %arg0, %c0_i32, %c0_i32_0 : i32, i32, i32
  }
  func.func @transform_16(%arg0: i32) -> (i32, i32, i32) {
    %c0_i32 = arith.constant 0 : i32
    %c0_i32_0 = arith.constant 0 : i32
    %c0_i32_1 = arith.constant 0 : i32
    return %arg0, %c0_i32, %c0_i32_0 : i32, i32, i32
  }
  func.func @transform_17(%arg0: i32) -> (i32, i32, i32) {
    %c0_i32 = arith.constant 0 : i32
    %c0_i32_0 = arith.constant 0 : i32
    %c0_i32_1 = arith.constant 0 : i32
    return %arg0, %c0_i32, %c0_i32_0 : i32, i32, i32
  }
  func.func @transform_18(%arg0: i32) -> (i32, i32) {
    %c0_i32 = arith.constant 0 : i32
    %c0_i32_0 = arith.constant 0 : i32
    %c0_i32_1 = arith.constant 0 : i32
    return %c0_i32, %c0_i32_0 : i32, i32
  }
  func.func @transform_19(%arg0: i32) -> (i32, i32) {
    %c0_i32 = arith.constant 0 : i32
    %c0_i32_0 = arith.constant 0 : i32
    %c0_i32_1 = arith.constant 0 : i32
    return %c0_i32, %c0_i32_0 : i32, i32
  }
  func.func @transform_20(%arg0: i32) -> (i32, i32) {
    %c0_i32 = arith.constant 0 : i32
    %c0_i32_0 = arith.constant 0 : i32
    %c0_i32_1 = arith.constant 0 : i32
    return %c0_i32, %c0_i32_0 : i32, i32
  }
  func.func @transform_21(%arg0: i32) -> (i32, i32) {
    %c0_i32 = arith.constant 0 : i32
    %c0_i32_0 = arith.constant 0 : i32
    %c0_i32_1 = arith.constant 0 : i32
    return %c0_i32, %c0_i32_0 : i32, i32
  }
  func.func @transform_22(%arg0: i32) -> (i32, i32) {
    %c0_i32 = arith.constant 0 : i32
    %c0_i32_0 = arith.constant 0 : i32
    %c0_i32_1 = arith.constant 0 : i32
    return %c0_i32, %c0_i32_0 : i32, i32
  }
  func.func @transform_23(%arg0: i32) -> (i32, i32) {
    %c0_i32 = arith.constant 0 : i32
    %c0_i32_0 = arith.constant 0 : i32
    %c0_i32_1 = arith.constant 0 : i32
    return %c0_i32, %c0_i32_0 : i32, i32
  }
}

</mosaic_0001>

<bundles_post_ra>
// kernel: tpu_custom_call.1
= control target key start
LH: loop header
LB: loop body
LE: loop exit
PB: predicated region body
PF: predicated region fallthrough
CT: control target
= control target key end

     0   :  { %s3293_s0 = inlined_call_operand.vmem [shape: f32[5,192], index: 0, kind: input, shape index: {}]   ;;  %s3294_s1 = inlined_call_operand.vmem [shape: bf16[192,32], index: 1, kind: input, shape index: {}]   ;;  %s3295_s2 = inlined_call_operand.vmem [shape: f32[5,32], index: 2, kind: input, shape index: {}]   ;;  %s3296_s3 = inlined_call_operand.vmem [shape: f32[5,32], index: 3, kind: input, shape index: {}]   ;;  %s3297_s4 = inlined_call_operand.vmem [shape: f32[1,32], index: 4, kind: input, shape index: {}]   ;;  %s3298_s5 = inlined_call_operand.vmem [shape: f32[1,32], index: 5, kind: input, shape index: {}]   ;;  %s3299_s6 = inlined_call_operand.vmem [shape: f32[1,1,32], index: 6, kind: input, shape index: {}]   ;;  %s3300_s7 = inlined_call_operand.vmem [shape: f32[1,1,32], index: 7, kind: input, shape index: {}]   ;;  %s3301_s8 = inlined_call_operand.vmem [shape: f32[1,1,32], index: 8, kind: input, shape index: {}]   ;;  %s3302_s9 = inlined_call_operand.vmem [shape: f32[1,1,32], index: 9, kind: input, shape index: {}]   ;;  %s3303_s10 = inlined_call_operand.vmem [shape: bf16[1,12,32,8], index: 10, kind: input, shape index: {}]   ;;  %s3304_s11 = inlined_call_operand.vmem [shape: f32[1,12,1,8], index: 11, kind: input, shape index: {}]   ;;  %s3305_s12 = inlined_call_operand.vmem [shape: bf16[1,4,8,32], index: 12, kind: input, shape index: {}]   ;;  %s3306_s13 = inlined_call_operand.vmem [shape: f32[1,1,32], index: 13, kind: input, shape index: {}]   ;;  %s3307_s14 = inlined_call_operand.vmem [shape: bf16[1,32,64], index: 14, kind: input, shape index: {}]   ;;  %s3308_s15 = inlined_call_operand.vmem [shape: f32[1,1,64], index: 15, kind: input, shape index: {}]   ;;  %s3309_s16 = inlined_call_operand.vmem [shape: bf16[1,64,32], index: 16, kind: input, shape index: {}]   ;;  %s3310_s17 = inlined_call_operand.vmem [shape: f32[1,1,32], index: 17, kind: input, shape index: {}]   ;;  %s3311_s18 = inlined_call_operand.vmem [shape: f32[4,5], index: 18, kind: input, shape index: {}]   ;;  %s3312_s19 = inlined_call_operand.vmem [shape: bf16[32,64], index: 19, kind: input, shape index: {}]   ;;  %s3313_s20 = inlined_call_operand.vmem [shape: f32[1,64], index: 20, kind: input, shape index: {}]   ;;  %s3314_s21 = inlined_call_operand.vmem [shape: bf16[64,64], index: 21, kind: input, shape index: {}]   ;;  %s3315_s22 = inlined_call_operand.vmem [shape: f32[1,64], index: 22, kind: input, shape index: {}]   ;;  %s3316_s23 = inlined_call_operand.hbm [shape: f32[4,64], index: 23, kind: output, shape index: {}]  }
   0x1   :  { %3319 = sst [smem:[#allocation6_spill]] %s3293_s0 }
   0x2   :  { %3320 = sst [smem:[#allocation7_spill]] %s3294_s1 }
   0x3   :  { %3321 = sst [smem:[#allocation8_spill]] %s3295_s2 }
   0x4   :  { %3322 = sst [smem:[#allocation9_spill]] %s3296_s3 }
   0x5   :  { %3323 = sst [smem:[#allocation10_spill]] %s3297_s4 }
   0x6   :  { %3324 = sst [smem:[#allocation11_spill]] %s3298_s5 }
   0x7   :  { %3325 = sst [smem:[#allocation12_spill]] %s3299_s6 }
   0x8   :  { %3326 = sst [smem:[#allocation13_spill]] %s3300_s7 }
   0x9   :  { %s3327_s24 = sld [smem:[#allocation7_spill]]  ;;  %v2721_v1 = vmov 0   ;;  %s3328_s3 = sld [smem:[#allocation6_spill]]  ;;  %vm181_vm0 = vcmask 523264  }
   0xa   :  { %185 = vmatprep.subr.bf16.mxu0 %v2721_v1 }
   0xf   :  { %v2621_v0 = vld [vmem:[%s3327_s24] sm:$0xff]   ;;  %v2622_v2 = vld [vmem:[%s3327_s24 + $0x8] sm:$0xff]   ;;  %v2623_v3 = vld [vmem:[%s3327_s24 + $0x10] sm:$0xff]  }
  0x10   :  { %186 = vmatpush1.bf16.msra.mxu0 %v2621_v0  ;;  %v2624_v4 = vld [vmem:[%s3327_s24 + $0x18] sm:$0xff]   ;;  %v2625_v5 = vld [vmem:[%s3327_s24 + $0x20] sm:$0xff]   ;;  %v81_v6 = vld [vmem:[%s3328_s3 + $0x8] sm:$0x1f] }
  0x11   :  { %187 = vmatprep.subr.bf16.mxu0 %v2721_v1  ;;  %v83_v7 = vpack.c.bf16 %v81_v6, %v81_v6  ;;  %v2626_v8 = vld [vmem:[%s3327_s24 + $0x28] sm:$0xff]   ;;  %v2627_v9 = vld [vmem:[%s3327_s24 + $0x30] sm:$0xff]   ;;  %v2628_v10 = vld [vmem:[%s3327_s24 + $0x38] sm:$0xff]  }
  0x12   :  { %v2629_v11 = vld [vmem:[%s3327_s24 + $0x40] sm:$0xff]   ;;  %v2630_v12 = vld [vmem:[%s3327_s24 + $0x48] sm:$0xff]  }
  0x13   :  { %2176 = vmatprep.mubr.msk.bf16.mxu0 %vm181_vm0, %v83_v7 }
  0x14   :  { %188 = vmatpush1.bf16.msra.mxu0 %v2622_v2 }
  0x15   :  { %189 = vmatprep.subr.bf16.mxu0 %v2721_v1 }
  0x18   :  { %190 = vmatpush1.bf16.msra.mxu0 %v2623_v3 }
  0x19   :  { %191 = vmatprep.subr.bf16.mxu0 %v2721_v1 }
  0x1c   :  { %192 = vmatpush1.bf16.msra.mxu0 %v2624_v4 }
  0x1d   :  { %193 = vmatprep.subr.bf16.mxu0 %v2721_v1 }
  0x20   :  { %194 = vmatpush1.bf16.msra.mxu0 %v2625_v5 }
  0x21   :  { %195 = vmatprep.subr.bf16.mxu0 %v2721_v1 }
  0x24   :  { %196 = vmatpush1.bf16.msra.mxu0 %v2626_v8 }
  0x25   :  { %197 = vmatprep.subr.bf16.mxu0 %v2721_v1 }
  0x28   :  { %198 = vmatpush1.bf16.msra.mxu0 %v2627_v9 }
  0x29   :  { %199 = vmatprep.subr.bf16.mxu0 %v2721_v1 }
  0x2c   :  { %200 = vmatpush1.bf16.msra.mxu0 %v2628_v10 }
  0x2d   :  { %201 = vmatprep.subr.bf16.mxu0 %v2721_v1 }
  0x30   :  { %202 = vmatpush1.bf16.msra.mxu0 %v2629_v11 }
  0x31   :  { %203 = vmatprep.subr.bf16.mxu0 %v2721_v1 }
  0x32   :  { %28 = vsyncpa [#allocation4], 0  ;;  %v2631_v13 = vld [vmem:[%s3327_s24 + $0x50] sm:$0xff]   ;;  %v2632_v14 = vld [vmem:[%s3327_s24 + $0x58] sm:$0xff]   ;;  %s3329_s1 = sld [smem:[#allocation8_spill]]  ;;  %s3330_s6 = sld [smem:[#allocation9_spill]] }
  0x33   :  { %v80_v15 = vld [vmem:[%s3328_s3] sm:$0x1f]  ;;  %vm229_vm1 = vcmask 258048   ;;  %s3331_s27 = sld [smem:[#allocation10_spill]]  ;;  %s3332_s29 = sld [smem:[#allocation11_spill]]  ;;  %v2634_v48 = vld [vmem:[%s3303_s10 + $0x10] sm:$0xff]  }
  0x34   :  { %204 = vmatpush1.bf16.msra.mxu0 %v2630_v12  ;;  %v82_v16 = vpack.c.bf16 %v80_v15, %v80_v15  ;;  %v2633_v47 = vld [vmem:[%s3303_s10] sm:$0xff]   ;;  %v2722_v49 = vmov 0.0   ;;  %v2635_v50 = vld [vmem:[%s3303_s10 + $0x8] sm:$0xff]   ;;  %v2636_v51 = vld [vmem:[%s3303_s10 + $0x18] sm:$0xff]   ;;  %vm2723_vm2 = vmmov 0   ;;  %s3333_s3 = sld [smem:[#allocation12_spill]] }
  0x35   :  { %205 = vmatprep.subr.bf16.mxu0 %v2721_v1  ;;  %2403 = vmatprep.subr.bf16.mxu1 %v2722_v49  ;;  %s3334_s28 = sld [smem:[#allocation13_spill]]  ;;  %vm315_vm3 = vcmask 261120   ;;  %v2637_v61 = vld [vmem:[%s3303_s10 + $0x40] sm:$0xff]   ;;  %v2638_v62 = vld [vmem:[%s3303_s10 + $0x90] sm:$0xff]   ;;  %v2639_v0 = vld [vmem:[%s3303_s10 + $0x48] sm:$0xff]   ;;  %vm556_vm4 = vcmask 1041408  }
  0x36   :  { %2404 = vmatpush3.bf16.msra.mxu1 %v2633_v47  ;;  %2407 = vmatprep.mubr.msk.bf16.mxu1 %vm2723_vm2, %v2722_v49  ;;  %v2641_v2 = vld [vmem:[%s3303_s10 + $0x80] sm:$0xff]   ;;  %v2642_v3 = vld [vmem:[%s3303_s10 + $0x88] sm:$0xff]   ;;  %vm557_vm5 = vcmask 1042432   ;;  %vm491_vm6 = vcmask 64512   ;;  %vm538_vm7 = vcmask 36864   ;;  %vm552_vm8 = vcmask 39936  }
  0x37   :  { %2405 = vmatprep.subr.bf16.mxu1 %v2722_v49  ;;  %v2190_v12 = vld [vmem:[%s3304_s11 + $0x4] ss:$0 sm:$0xff]  ;;  %vm608_vm9 = vcmask 1043456   ;;  %vm1915_vm10 = vcmask 1044480   ;;  %s2725_s30 = smov [#allocation3]   ;;  %vm2148_vm11 = vcmask 519168  }
  0x38   :  { %206 = vmatpush1.bf16.msra.mxu0 %v2631_v13  ;;  %v108_v17 = vld [vmem:[%s3329_s1] sm:$0x1f]  ;;  %v2229_v13 = vld [vmem:[%s3304_s11 + $0x9] ss:$0 sm:$0xff] }
  0x39   :  { %207 = vmatprep.subr.bf16.mxu0 %v2721_v1  ;;  %v225_v19 = vld [vmem:[%s3330_s6] sm:$0x1f]  ;;  %v2640_v1 = vld [vmem:[%s3303_s10 + $0x98] sm:$0xff]  }
  0x3a   :  { %v2177_v35 = vld [vmem:[%s3331_s27] ss:$0 sm:$0xff]  ;;  %2406 = vmatpush3.bf16.msra.mxu1 %v2635_v50 }
  0x3b   :  { %v2178_v37 = vld [vmem:[%s3332_s29] ss:$0 sm:$0xff]  ;;  %2411 = vmatprep.subr.bf16.mxu1 %v2722_v49 }
  0x3c   :  { %208 = vmatpush1.bf16.msra.mxu0 %v2632_v14  ;;  %v2179_v56 = vld [vmem:[%s3333_s3] ss:$0 sm:$0xff]  ;;  %v2724_v14 = vmov 65535  }
  0x3d   :  { %2445 = vmatprep.subr.bf16.mxu0 %v2722_v49  ;;  %v2180_v58 = vld [vmem:[%s3334_s28] ss:$0 sm:$0xff]  ;;  %v558_v15 = vsel %vm556_vm4, 4294967295, %v2724_v14 }
  0x3f   :  { %218 = vmatmul.mubr.bf16.vlgmr.msra.gmra.mrb[0].mxu0 %v82_v16 }
  0x40   :  { %2446 = vmatpush3.bf16.msra.mxu0 %v2634_v48  ;;  %2449 = vmatprep.mubr.msk.bf16.mxu0 %vm2723_vm2, %v2722_v49 }
  0x41   :  { %2447 = vmatprep.subr.bf16.mxu0 %v2722_v49 }
  0x44   :  { %2448 = vmatpush3.bf16.msra.mxu0 %v2636_v51 }
  0x45   :  { %2461 = vmatprep.subr.bf16.mxu0 %v2722_v49 }
 0x112   :  { %v219_v18 = vpop.f32.mrb[0].mxu0 }
 0x113   :  { %v220_v20 = vadd.f32 %v219_v18, %v108_v17  ;;  %v221_v21 = vpop.f32.mrb[1].mxu0 }
 0x114   :  { %v222_v22 = vpop.f32.mrb[2].mxu0 }
 0x115   :  { %v223_v23 = vpop.f32.mrb[3].mxu0  ;;  %v226_v24 = vadd.f32 %v225_v19, %v220_v20  ;;  %v2992_v22 = vsel %vm557_vm5, %v558_v15, 0 }
 0x117   :  { %v230_v25 = vsel %vm229_vm1, %v226_v24, 0.0 }
 0x118   :  { %231 = vadd.xlane.f32.xlu0 %v230_v25 }
 0x1a5   :  { %v232_v26 = vpop.xlane.xlu0 %231 }
 0x1a6   :  { %v234_v27 = vmul.f32 0.03125, %v232_v26 }
 0x1a8   :  { %v235_v28 = vsub.f32 %v226_v24, %v234_v27 }
 0x1aa   :  { %v236_v29 = vmul.f32 %v235_v28, %v235_v28 }
 0x1ac   :  { %v237_v30 = vsel %vm229_vm1, %v236_v29, 0.0  ;;  %v2181_v29 = vld [vmem:[%s3304_s11] ss:$0 sm:$0xff] }
 0x1ad   :  { %238 = vadd.xlane.f32.xlu0 %v237_v30 }
 0x23a   :  { %v239_v31 = vpop.xlane.xlu0 %238 }
 0x23b   :  { %v240_v32 = vmul.f32 0.03125, %v239_v31 }
 0x23d   :  { %v241_v33 = vadd.f32 1e-05, %v240_v32  ;;  %v2199_v32 = vld [vmem:[%s3304_s11 + $0x8] ss:$0 sm:$0xff] }
 0x23f   :  { %2669 = vrsqrt.f32 %v241_v33 }
 0x249   :  { %v2670_v34 = vpop.eup %2669 }
 0x24a   :  { %v243_v36 = vmul.f32 %v2670_v34, %v235_v28 }
 0x24c   :  { %v250_v38 = vmul.f32 %v2177_v35, %v243_v36 }
 0x24e   :  { %v257_v39 = vadd.f32 %v2178_v37, %v250_v38 }
 0x250   :  { %258 = vst.msk [vmem:[#allocation2] sm:$0x1f] %vm229_vm1, %v257_v39 }
 0x257   :  { %v2904_v40 = vld [vmem:[#allocation2] sm:$0x1f] }
 0x258   :  { %v263_v41 = vsel %vm229_vm1, %v2904_v40, 0.0 }
 0x259   :  { %264 = vadd.xlane.f32.xlu1 %v263_v41 }
 0x2e6   :  { %v265_v42 = vpop.xlane.xlu1 %264 }
 0x2e7   :  { %v267_v43 = vmul.f32 0.03125, %v265_v42 }
 0x2e9   :  { %v268_v44 = vsub.f32 %v2904_v40, %v267_v43 }
 0x2eb   :  { %v269_v45 = vmul.f32 %v268_v44, %v268_v44 }
 0x2ed   :  { %v270_v46 = vsel %vm229_vm1, %v269_v45, 0.0 }
 0x2ee   :  { %271 = vadd.xlane.f32.xlu1 %v270_v46 }
 0x37b   :  { %v272_v52 = vpop.xlane.xlu1 %271 }
 0x37c   :  { %v273_v53 = vmul.f32 0.03125, %v272_v52 }
 0x37e   :  { %v274_v54 = vadd.f32 1e-05, %v273_v53 }
 0x380   :  { %2671 = vrsqrt.f32 %v274_v54 }
 0x38a   :  { %v2672_v55 = vpop.eup %2671 }
 0x38b   :  { %v276_v57 = vmul.f32 %v2672_v55, %v268_v44 }
 0x38d   :  { %v283_v59 = vmul.f32 %v2179_v56, %v276_v57 }
 0x38f   :  { %v290_v60 = vadd.f32 %v2180_v58, %v283_v59  ;;  %v604_v58 = vld [vmem:[%s3305_s12] sm:$0xf] }
 0x390   :  { %v610_v59 = vsel %vm608_vm9, %v604_v58, 0 }
 0x391   :  { %v2944_v63 = vpack.c.bf16 %v290_v60, %v290_v60 }
 0x393   :  { %2408 = vmatmul.mubr.msk.bf16.vlgmr.msra.gmra.mrb[0].mxu1 %vm315_vm3, %v2944_v63  ;;  %2450 = vmatmul.mubr.msk.bf16.vlgmr.msra.gmra.mrb[4].mxu0 %vm315_vm3, %v2944_v63 }
 0x394   :  { %2412 = vmatpush3.bf16.msra.mxu1 %v2637_v61  ;;  %2462 = vmatpush3.bf16.msra.mxu0 %v2638_v62  ;;  %v2643_v61 = vld [vmem:[%s3303_s10 + $0x50] sm:$0xff]  }
 0x395   :  { %2413 = vmatprep.subr.bf16.mxu1 %v2722_v49  ;;  %2463 = vmatprep.subr.bf16.mxu0 %v2722_v49 }
 0x396   :  { %2415 = vmatprep.mubr.msk.bf16.mxu1 %vm2723_vm2, %v2722_v49  ;;  %2465 = vmatprep.mubr.msk.bf16.mxu0 %vm2723_vm2, %v2722_v49 }
 0x398   :  { %2414 = vmatpush3.bf16.msra.mxu1 %v2639_v0  ;;  %2464 = vmatpush3.bf16.msra.mxu0 %v2640_v1 }
 0x399   :  { %2419 = vmatprep.subr.bf16.mxu1 %v2722_v49  ;;  %2475 = vmatprep.subr.bf16.mxu0 %v2722_v49 }
 0x39b   :  { %2416 = vmatmul.mubr.msk.bf16.vlgmr.msra.gmra.mrb[4].mxu1 %vm315_vm3, %v2944_v63  ;;  %2466 = vmatmul.mubr.msk.bf16.vlgmr.msra.gmra.mrb[8].mxu0 %vm315_vm3, %v2944_v63 }
 0x39c   :  { %2420 = vmatpush3.bf16.msra.mxu1 %v2641_v2  ;;  %2423 = vmatprep.mubr.msk.bf16.mxu1 %vm2723_vm2, %v2722_v49 }
 0x39d   :  { %2421 = vmatprep.subr.bf16.mxu1 %v2722_v49  ;;  %2477 = vmatprep.mubr.msk.bf16.mxu0 %vm2723_vm2, %v2722_v49 }
 0x3a0   :  { %2422 = vmatpush3.bf16.msra.mxu1 %v2642_v3  ;;  %v2644_v3 = vld [vmem:[%s3303_s10 + $0x58] sm:$0xff]  }
 0x3a1   :  { %2427 = vmatprep.subr.bf16.mxu1 %v2722_v49 }
 0x3a3   :  { %2424 = vmatmul.mubr.msk.bf16.vlgmr.msra.gmra.mrb[8].mxu1 %vm315_vm3, %v2944_v63 }
 0x3a4   :  { %2429 = vmatprep.mubr.msk.bf16.mxu1 %vm2723_vm2, %v2722_v49 }
 0x466   :  { %v353_v4 = vpop.f32.mrb[0].mxu1  ;;  %v2984_v5 = vpop.f32.mrb[4].mxu0 }
 0x467   :  { %v2409_v6 = vpop.f32.mrb[1].mxu1  ;;  %v2451_v7 = vpop.f32.mrb[5].mxu0  ;;  %v354_v33 = vadd.f32 %v2181_v29, %v353_v4 }
 0x468   :  { %v356_v8 = vpop.f32.mrb[2].mxu1  ;;  %v715_v9 = vpop.f32.mrb[6].mxu0 }
 0x469   :  { %v2410_v10 = vpop.f32.mrb[3].mxu1  ;;  %v2452_v11 = vpop.f32.mrb[7].mxu0  ;;  %v489_v38 = vpack.c.bf16 %v354_v33, %v354_v33  ;;  %v2220_v9 = vld [vmem:[%s3304_s11 + $0x5] ss:$0 sm:$0xff] }
 0x46a   :  { %v2645_v33 = vld [vmem:[%s3303_s10 + $0x20] sm:$0xff]  }
 0x46e   :  { %v418_v16 = vpop.f32.mrb[4].mxu1  ;;  %v842_v17 = vpop.f32.mrb[8].mxu0 }
 0x46f   :  { %v419_v18 = vadd.f32 %v2190_v12, %v418_v16  ;;  %v843_v19 = vadd.f32 %v2229_v13, %v842_v17  ;;  %v2417_v20 = vpop.f32.mrb[5].mxu1  ;;  %v2467_v21 = vpop.f32.mrb[9].mxu0  ;;  %v2211_v16 = vld [vmem:[%s3304_s11 + $0x1] ss:$0 sm:$0xff] }
 0x470   :  { %v421_v23 = vpop.f32.mrb[6].mxu1  ;;  %v845_v24 = vpop.f32.mrb[10].mxu0 }
 0x471   :  { %v490_v25 = vpack.c.bf16 %v419_v18, %v419_v18  ;;  %v908_v26 = vpack.c.bf16 %v843_v19, %v843_v19  ;;  %v2418_v27 = vpop.f32.mrb[7].mxu1  ;;  %v2468_v28 = vpop.f32.mrb[11].mxu0  ;;  %v713_v18 = vadd.f32 %v2211_v16, %v2984_v5 }
 0x473   :  { %v496_v30 = vsel %vm491_vm6, %v490_v25, 0  ;;  %v913_v31 = vand.u32 %v908_v26, %v2992_v22  ;;  %v848_v19 = vpack.c.bf16 %v713_v18, %v713_v18 }
 0x474   :  { %2428 = vmatpush3.bf16.xpose.msra.mxu1 %v496_v30 }
 0x475   :  { %2476 = vmatpush3.bf16.msra.mxu0 %v913_v31  ;;  %2433 = vmatprep.subr.bf16.mxu1 %v2722_v49 }
 0x476   :  { %v483_v34 = vpop.f32.mrb[8].mxu1  ;;  %2487 = vmatprep.subr.bf16.mxu0 %v2722_v49 }
 0x477   :  { %v484_v35 = vadd.f32 %v2199_v32, %v483_v34  ;;  %v2425_v36 = vpop.f32.mrb[9].mxu1 }
 0x478   :  { %v486_v37 = vpop.f32.mrb[10].mxu1  ;;  %v2647_v36 = vld [vmem:[%s3303_s10 + $0xa0] sm:$0xff]  }
 0x479   :  { %v551_v39 = vpack.c.bf16 %v484_v35, %v484_v35  ;;  %v2426_v41 = vpop.f32.mrb[11].mxu1  ;;  %v2646_v35 = vld [vmem:[%s3303_s10 + $0x28] sm:$0xff]  }
 0x47a   :  { %v2648_v37 = vld [vmem:[%s3303_s10 + $0xa8] sm:$0xff]  }
 0x47b   :  { %v561_v42 = vand.u32 %v2992_v22, %v551_v39  ;;  %2430 = vmatmul.mubr.msk.bf16.vlgmr.msra.gmra.mrb[12].mxu1 %vm491_vm6, %v489_v38  ;;  %v2235_v38 = vld [vmem:[%s3305_s12 + $0x4] sm:$0xf] }
 0x47c   :  { %2435 = vmatprep.mubr.msk.bf16.mxu1 %vm2723_vm2, %v2722_v49  ;;  %v962_v39 = vsel %vm608_vm9, %v2235_v38, 0 }
 0x47d   :  { %2434 = vmatpush3.bf16.msra.mxu1 %v561_v42  ;;  %v2649_v42 = vld [vmem:[%s3303_s10 + $0x60] sm:$0xff]  }
 0x47e   :  { %2439 = vmatprep.subr.bf16.mxu1 %v2722_v49 }
 0x54e   :  { %v532_v43 = vpop.f32.mrb[12].mxu1 }
 0x54f   :  { %v2431_v44 = vpop.f32.mrb[13].mxu1  ;;  %v539_v45 = vsel %vm538_vm7, %v532_v43, -inf }
 0x550   :  { %540 = vmax.xlane.f32.xlu0 %v539_v45  ;;  %v535_v46 = vpop.f32.mrb[14].mxu1 }
 0x551   :  { %v2432_v47 = vpop.f32.mrb[15].mxu1 }
 0x552   :  { %v2650_v47 = vld [vmem:[%s3303_s10 + $0x68] sm:$0xff]  }
 0x5dd   :  { %v541_v48 = vpop.xlane.xlu0 %540 }
 0x5de   :  { %v542_v50 = vsub.f32 %v532_v43, %v541_v48 }
 0x5e0   :  { %v543_v51 = vmul.f32 1.442695, %v542_v50 }
 0x5e2   :  { %2673 = vpow2.f32 %v543_v51 }
 0x5ec   :  { %v2674_v52 = vpop.eup %2673 }
 0x5ed   :  { %v545_v53 = vsel %vm538_vm7, %v2674_v52, 0.0 }
 0x5ee   :  { %546 = vadd.xlane.f32.xlu1 %v545_v53  ;;  %v2260_v53 = vld [vmem:[%s3304_s11 + $0xa] ss:$0 sm:$0xff] }
 0x67b   :  { %v547_v54 = vpop.xlane.xlu1 %546 }
 0x67c   :  { %2675 = vrcp.f32 %v547_v54 }
 0x686   :  { %v2676_v55 = vpop.eup %2675 }
 0x687   :  { %v549_v56 = vmul.f32 %v2676_v55, %v2674_v52 }
 0x689   :  { %v550_v57 = vpack.c.bf16 %v549_v56, %v549_v56 }
 0x68b   :  { %2436 = vmatmul.mubr.msk.bf16.vlgmr.msra.gmra.mrb[16].mxu1 %vm552_vm8, %v550_v57 }
 0x68c   :  { %2441 = vmatprep.mubr.msk.bf16.mxu1 %vm2723_vm2, %v2722_v49  ;;  %2440 = vmatpush3.bf16.msra.mxu1 %v610_v59 }
 0x68d   :  { %2453 = vmatprep.subr.bf16.mxu1 %v2722_v49 }
 0x75e   :  { %v597_v60 = vpop.f32.mrb[16].mxu1 }
 0x75f   :  { %v603_v62 = vpack.c.bf16 %v597_v60, %v597_v60  ;;  %v2437_v0 = vpop.f32.mrb[17].mxu1 }
 0x760   :  { %v600_v1 = vpop.f32.mrb[18].mxu1 }
 0x761   :  { %v2438_v2 = vpop.f32.mrb[19].mxu1  ;;  %2442 = vmatmul.mubr.msk.bf16.vlgmr.msra.gmra.mrb[20].mxu1 %vm491_vm6, %v603_v62 }
 0x762   :  { %2454 = vmatpush3.bf16.msra.mxu1 %v2643_v61  ;;  %2457 = vmatprep.mubr.msk.bf16.mxu1 %vm2723_vm2, %v2722_v49 }
 0x763   :  { %2455 = vmatprep.subr.bf16.mxu1 %v2722_v49 }
 0x766   :  { %2456 = vmatpush3.bf16.msra.mxu1 %v2644_v3 }
 0x767   :  { %2469 = vmatprep.subr.bf16.mxu1 %v2722_v49 }
 0x769   :  { %2458 = vmatmul.mubr.msk.bf16.vlgmr.msra.gmra.mrb[24].mxu1 %vm315_vm3, %v2944_v63 }
 0x76a   :  { %2471 = vmatprep.mubr.msk.bf16.mxu1 %vm2723_vm2, %v2722_v49 }
 0x834   :  { %v3034_v4 = vpop.f32.mrb[20].mxu1 }
 0x835   :  { %v2443_v6 = vpop.f32.mrb[21].mxu1  ;;  %v652_v61 = vadd.f32 %v3034_v4, %v2904_v40  ;;  %v2242_v40 = vld [vmem:[%s3304_s11 + $0x2] ss:$0 sm:$0xff] }
 0x836   :  { %v649_v7 = vpop.f32.mrb[22].mxu1  ;;  %v2251_v6 = vld [vmem:[%s3304_s11 + $0x6] ss:$0 sm:$0xff] }
 0x837   :  { %v2444_v8 = vpop.f32.mrb[23].mxu1 }
 0x83c   :  { %v777_v10 = vpop.f32.mrb[24].mxu1 }
 0x83d   :  { %v778_v11 = vadd.f32 %v2220_v9, %v777_v10  ;;  %v2459_v12 = vpop.f32.mrb[25].mxu1 }
 0x83e   :  { %v780_v13 = vpop.f32.mrb[26].mxu1 }
 0x83f   :  { %v849_v14 = vpack.c.bf16 %v778_v11, %v778_v11  ;;  %v2460_v15 = vpop.f32.mrb[27].mxu1 }
 0x841   :  { %v854_v17 = vsel %vm491_vm6, %v849_v14, 0 }
 0x842   :  { %2470 = vmatpush3.bf16.xpose.msra.mxu1 %v854_v17 }
 0x843   :  { %2481 = vmatprep.subr.bf16.mxu1 %v2722_v49 }
 0x849   :  { %2472 = vmatmul.mubr.msk.bf16.vlgmr.msra.gmra.mrb[28].mxu1 %vm491_vm6, %v848_v19 }
 0x84a   :  { %2483 = vmatprep.mubr.msk.bf16.mxu1 %vm2723_vm2, %v2722_v49  ;;  %2482 = vmatpush3.bf16.msra.mxu1 %v962_v39 }
 0x84b   :  { %2495 = vmatprep.subr.bf16.mxu1 %v2722_v49 }
 0x91c   :  { %v890_v20 = vpop.f32.mrb[28].mxu1 }
 0x91d   :  { %v2473_v21 = vpop.f32.mrb[29].mxu1  ;;  %v896_v23 = vsel %vm538_vm7, %v890_v20, -inf }
 0x91e   :  { %897 = vmax.xlane.f32.xlu0 %v896_v23  ;;  %v893_v24 = vpop.f32.mrb[30].mxu1 }
 0x91f   :  { %v2474_v25 = vpop.f32.mrb[31].mxu1 }
 0x9ab   :  { %v898_v26 = vpop.xlane.xlu0 %897 }
 0x9ac   :  { %v899_v27 = vsub.f32 %v890_v20, %v898_v26 }
 0x9ae   :  { %v900_v28 = vmul.f32 1.442695, %v899_v27 }
 0x9b0   :  { %2677 = vpow2.f32 %v900_v28 }
 0x9ba   :  { %v2678_v5 = vpop.eup %2677 }
 0x9bb   :  { %v902_v29 = vsel %vm538_vm7, %v2678_v5, 0.0 }
 0x9bc   :  { %903 = vadd.xlane.f32.xlu1 %v902_v29 }
 0xa49   :  { %v904_v30 = vpop.xlane.xlu1 %903 }
 0xa4a   :  { %2679 = vrcp.f32 %v904_v30  ;;  %v2652_v30 = vld [vmem:[%s3303_s10 + $0x38] sm:$0xff]  }
 0xa54   :  { %v2680_v31 = vpop.eup %2679 }
 0xa55   :  { %v906_v32 = vmul.f32 %v2680_v31, %v2678_v5  ;;  %v2651_v5 = vld [vmem:[%s3303_s10 + $0x30] sm:$0xff]  }
 0xa56   :  { %v2653_v31 = vld [vmem:[%s3303_s10 + $0xb0] sm:$0xff]  }
 0xa57   :  { %v907_v34 = vpack.c.bf16 %v906_v32, %v906_v32  ;;  %v2654_v32 = vld [vmem:[%s3303_s10 + $0xb8] sm:$0xff]  }
 0xa59   :  { %2478 = vmatmul.mubr.msk.bf16.vlgmr.msra.gmra.mrb[12].mxu0 %vm552_vm8, %v907_v34 }
 0xa5a   :  { %2488 = vmatpush3.bf16.msra.mxu0 %v2645_v33  ;;  %2491 = vmatprep.mubr.msk.bf16.mxu0 %vm2723_vm2, %v2722_v49  ;;  %v2266_v33 = vld [vmem:[%s3305_s12 + $0x8] sm:$0xf] }
 0xa5b   :  { %2489 = vmatprep.subr.bf16.mxu0 %v2722_v49  ;;  %v1314_v34 = vsel %vm608_vm9, %v2266_v33, 0 }
 0xa5e   :  { %2490 = vmatpush3.bf16.msra.mxu0 %v2646_v35 }
 0xa5f   :  { %2503 = vmatprep.subr.bf16.mxu0 %v2722_v49 }
 0xa61   :  { %2492 = vmatmul.mubr.msk.bf16.vlgmr.msra.gmra.mrb[16].mxu0 %vm315_vm3, %v2944_v63 }
 0xa62   :  { %2504 = vmatpush3.bf16.msra.mxu0 %v2647_v36  ;;  %2507 = vmatprep.mubr.msk.bf16.mxu0 %vm2723_vm2, %v2722_v49  ;;  %v2655_v36 = vld [vmem:[%s3303_s10 + $0x70] sm:$0xff]  }
 0xa63   :  { %2505 = vmatprep.subr.bf16.mxu0 %v2722_v49 }
 0xa66   :  { %2506 = vmatpush3.bf16.msra.mxu0 %v2648_v37 }
 0xa67   :  { %2517 = vmatprep.subr.bf16.mxu0 %v2722_v49 }
 0xa69   :  { %2508 = vmatmul.mubr.msk.bf16.vlgmr.msra.gmra.mrb[20].mxu0 %vm315_vm3, %v2944_v63 }
 0xa6a   :  { %2519 = vmatprep.mubr.msk.bf16.mxu0 %vm2723_vm2, %v2722_v49 }
 0xb2c   :  { %v949_v41 = vpop.f32.mrb[12].mxu0 }
 0xb2d   :  { %v955_v43 = vpack.c.bf16 %v949_v41, %v949_v41  ;;  %v2479_v44 = vpop.f32.mrb[13].mxu0 }
 0xb2e   :  { %v952_v45 = vpop.f32.mrb[14].mxu0 }
 0xb2f   :  { %v2480_v46 = vpop.f32.mrb[15].mxu0  ;;  %2484 = vmatmul.mubr.msk.bf16.vlgmr.msra.gmra.mrb[32].mxu1 %vm491_vm6, %v955_v43 }
 0xb30   :  { %2496 = vmatpush3.bf16.msra.mxu1 %v2649_v42  ;;  %2499 = vmatprep.mubr.msk.bf16.mxu1 %vm2723_vm2, %v2722_v49  ;;  %v2656_v42 = vld [vmem:[%s3303_s10 + $0x78] sm:$0xff]  }
 0xb31   :  { %2497 = vmatprep.subr.bf16.mxu1 %v2722_v49 }
 0xb34   :  { %v1064_v48 = vpop.f32.mrb[16].mxu0  ;;  %2498 = vmatpush3.bf16.msra.mxu1 %v2650_v47  ;;  %v2291_v47 = vld [vmem:[%s3304_s11 + $0xb] ss:$0 sm:$0xff] }
 0xb35   :  { %v2493_v50 = vpop.f32.mrb[17].mxu0  ;;  %2511 = vmatprep.subr.bf16.mxu1 %v2722_v49  ;;  %v1065_v13 = vadd.f32 %v2242_v40, %v1064_v48 }
 0xb36   :  { %v1067_v51 = vpop.f32.mrb[18].mxu0 }
 0xb37   :  { %v2494_v52 = vpop.f32.mrb[19].mxu0  ;;  %2500 = vmatmul.mubr.msk.bf16.vlgmr.msra.gmra.mrb[36].mxu1 %vm315_vm3, %v2944_v63  ;;  %v1200_v14 = vpack.c.bf16 %v1065_v13, %v1065_v13 }
 0xb38   :  { %2513 = vmatprep.mubr.msk.bf16.mxu1 %vm2723_vm2, %v2722_v49 }
 0xb3c   :  { %v1194_v54 = vpop.f32.mrb[20].mxu0 }
 0xb3d   :  { %v1195_v55 = vadd.f32 %v2260_v53, %v1194_v54  ;;  %v2509_v56 = vpop.f32.mrb[21].mxu0 }
 0xb3e   :  { %v1197_v57 = vpop.f32.mrb[22].mxu0 }
 0xb3f   :  { %v1260_v58 = vpack.c.bf16 %v1195_v55, %v1195_v55  ;;  %v2510_v59 = vpop.f32.mrb[23].mxu0 }
 0xb41   :  { %v1265_v60 = vand.u32 %v1260_v58, %v2992_v22 }
 0xb43   :  { %2518 = vmatpush3.bf16.msra.mxu0 %v1265_v60  ;;  %v2282_v60 = vld [vmem:[%s3304_s11 + $0x7] ss:$0 sm:$0xff] }
 0xb44   :  { %2529 = vmatprep.subr.bf16.mxu0 %v2722_v49 }
 0xc02   :  { %v998_v62 = vpop.f32.mrb[32].mxu1 }
 0xc03   :  { %v3104_v0 = vadd.f32 %v998_v62, %v652_v61  ;;  %v2485_v1 = vpop.f32.mrb[33].mxu1 }
 0xc04   :  { %v1001_v2 = vpop.f32.mrb[34].mxu1 }
 0xc05   :  { %v2486_v3 = vpop.f32.mrb[35].mxu1 }
 0xc0a   :  { %v1129_v7 = vpop.f32.mrb[36].mxu1 }
 0xc0b   :  { %v1130_v8 = vadd.f32 %v2251_v6, %v1129_v7  ;;  %v2501_v9 = vpop.f32.mrb[37].mxu1 }
 0xc0c   :  { %v1132_v10 = vpop.f32.mrb[38].mxu1 }
 0xc0d   :  { %v1201_v11 = vpack.c.bf16 %v1130_v8, %v1130_v8  ;;  %v2502_v12 = vpop.f32.mrb[39].mxu1 }
 0xc0f   :  { %v1206_v4 = vsel %vm491_vm6, %v1201_v11, 0 }
 0xc10   :  { %2512 = vmatpush3.bf16.xpose.msra.mxu1 %v1206_v4 }
 0xc11   :  { %2523 = vmatprep.subr.bf16.mxu1 %v2722_v49 }
 0xc17   :  { %2514 = vmatmul.mubr.msk.bf16.vlgmr.msra.gmra.mrb[40].mxu1 %vm491_vm6, %v1200_v14 }
 0xc18   :  { %2525 = vmatprep.mubr.msk.bf16.mxu1 %vm2723_vm2, %v2722_v49  ;;  %2524 = vmatpush3.bf16.msra.mxu1 %v1314_v34 }
 0xc19   :  { %2537 = vmatprep.subr.bf16.mxu1 %v2722_v49 }
 0xcea   :  { %v1242_v15 = vpop.f32.mrb[40].mxu1 }
 0xceb   :  { %v2515_v16 = vpop.f32.mrb[41].mxu1  ;;  %v1248_v17 = vsel %vm538_vm7, %v1242_v15, -inf }
 0xcec   :  { %1249 = vmax.xlane.f32.xlu0 %v1248_v17  ;;  %v1245_v18 = vpop.f32.mrb[42].mxu1 }
 0xced   :  { %v2516_v19 = vpop.f32.mrb[43].mxu1 }
 0xd79   :  { %v1250_v20 = vpop.xlane.xlu0 %1249 }
 0xd7a   :  { %v1251_v21 = vsub.f32 %v1242_v15, %v1250_v20 }
 0xd7c   :  { %v1252_v23 = vmul.f32 1.442695, %v1251_v21  ;;  %v2297_v21 = vld [vmem:[%s3305_s12 + $0xc] sm:$0xf] }
 0xd7e   :  { %2681 = vpow2.f32 %v1252_v23  ;;  %v1666_v23 = vsel %vm608_vm9, %v2297_v21, 0  ;;  %v2666_v21 = vld [vmem:[%s3314_s21 + $0x8] sm:$0xff]  }
 0xd88   :  { %v2682_v24 = vpop.eup %2681 }
 0xd89   :  { %v1254_v25 = vsel %vm538_vm7, %v2682_v24, 0.0 }
 0xd8a   :  { %1255 = vadd.xlane.f32.xlu1 %v1254_v25 }
 0xe17   :  { %v1256_v26 = vpop.xlane.xlu1 %1255 }
 0xe18   :  { %2683 = vrcp.f32 %v1256_v26 }
 0xe22   :  { %v2684_v27 = vpop.eup %2683 }
 0xe23   :  { %v1258_v28 = vmul.f32 %v2684_v27, %v2682_v24 }
 0xe25   :  { %v1259_v29 = vpack.c.bf16 %v1258_v28, %v1258_v28 }
 0xe27   :  { %2520 = vmatmul.mubr.msk.bf16.vlgmr.msra.gmra.mrb[24].mxu0 %vm552_vm8, %v1259_v29  ;;  %v2299_v29 = vld [vmem:[%s3306_s13] ss:$0 sm:$0xff] }
 0xe28   :  { %2530 = vmatpush3.bf16.msra.mxu0 %v2651_v5  ;;  %2533 = vmatprep.mubr.msk.bf16.mxu0 %vm2723_vm2, %v2722_v49 }
 0xe29   :  { %2531 = vmatprep.subr.bf16.mxu0 %v2722_v49 }
 0xe2c   :  { %2532 = vmatpush3.bf16.msra.mxu0 %v2652_v30 }
 0xe2d   :  { %2545 = vmatprep.subr.bf16.mxu0 %v2722_v49 }
 0xe2f   :  { %2534 = vmatmul.mubr.msk.bf16.vlgmr.msra.gmra.mrb[28].mxu0 %vm315_vm3, %v2944_v63 }
 0xe30   :  { %2546 = vmatpush3.bf16.msra.mxu0 %v2653_v31  ;;  %2549 = vmatprep.mubr.msk.bf16.mxu0 %vm2723_vm2, %v2722_v49 }
 0xe31   :  { %2547 = vmatprep.subr.bf16.mxu0 %v2722_v49 }
 0xe34   :  { %2548 = vmatpush3.bf16.msra.mxu0 %v2654_v32 }
 0xe35   :  { %2559 = vmatprep.subr.bf16.mxu0 %v2722_v49 }
 0xe37   :  { %2550 = vmatmul.mubr.msk.bf16.vlgmr.msra.gmra.mrb[32].mxu0 %vm315_vm3, %v2944_v63 }
 0xe38   :  { %2561 = vmatprep.mubr.msk.bf16.mxu0 %vm2723_vm2, %v2722_v49 }
 0xefa   :  { %v1301_v35 = vpop.f32.mrb[24].mxu0 }
 0xefb   :  { %v1307_v37 = vpack.c.bf16 %v1301_v35, %v1301_v35  ;;  %v2521_v38 = vpop.f32.mrb[25].mxu0 }
 0xefc   :  { %v1304_v39 = vpop.f32.mrb[26].mxu0 }
 0xefd   :  { %v2522_v41 = vpop.f32.mrb[27].mxu0  ;;  %2526 = vmatmul.mubr.msk.bf16.vlgmr.msra.gmra.mrb[44].mxu1 %vm491_vm6, %v1307_v37 }
 0xefe   :  { %2538 = vmatpush3.bf16.msra.mxu1 %v2655_v36  ;;  %2541 = vmatprep.mubr.msk.bf16.mxu1 %vm2723_vm2, %v2722_v49 }
 0xeff   :  { %2539 = vmatprep.subr.bf16.mxu1 %v2722_v49 }
 0xf02   :  { %v1416_v43 = vpop.f32.mrb[28].mxu0  ;;  %2540 = vmatpush3.bf16.msra.mxu1 %v2656_v42  ;;  %v2657_v42 = vld [vmem:[%s3307_s14] sm:$0xff]  }
 0xf03   :  { %v2535_v44 = vpop.f32.mrb[29].mxu0  ;;  %2553 = vmatprep.subr.bf16.mxu1 %v2722_v49 }
 0xf04   :  { %v1419_v45 = vpop.f32.mrb[30].mxu0 }
 0xf05   :  { %v2536_v46 = vpop.f32.mrb[31].mxu0  ;;  %2542 = vmatmul.mubr.msk.bf16.vlgmr.msra.gmra.mrb[48].mxu1 %vm315_vm3, %v2944_v63 }
 0xf06   :  { %2555 = vmatprep.mubr.msk.bf16.mxu1 %vm2723_vm2, %v2722_v49 }
 0xf0a   :  { %v1546_v48 = vpop.f32.mrb[32].mxu0 }
 0xf0b   :  { %v1547_v50 = vadd.f32 %v2291_v47, %v1546_v48  ;;  %v2551_v51 = vpop.f32.mrb[33].mxu0  ;;  %v2300_v48 = vld [vmem:[%s3301_s8] ss:$0 sm:$0xff]  ;;  %s2156_s8 = sshll.u32 %s2725_s30, 4  ;;  %s2157_s8 = int_to_ptr.vmem [resolvable:$true] %s2156_s8 }
 0xf0c   :  { %v1549_v52 = vpop.f32.mrb[34].mxu0  ;;  %v2301_v51 = vld [vmem:[%s3302_s9] ss:$0 sm:$0xff]  ;;  %s2697_s25 = scalar_lea.vmem %s2157_s8, 64  ;;  %p2702_p1 = scmp.lt.s32.totalorder %s2157_s8, %s2157_s8 }
 0xf0d   :  { %v1612_v53 = vpack.c.bf16 %v1547_v50, %v1547_v50  ;;  %v2552_v54 = vpop.f32.mrb[35].mxu0  ;;  %p2698_p0 = scmp.ne.s32.totalorder %s2157_s8, %s2697_s25  ;;  %p2703_p2 = scmp.lt.s32.totalorder %s2697_s25, %s2697_s25 }
 0xf0f   :  { %v1617_v55 = vand.u32 %v1612_v53, %v2992_v22  ;;  %v2273_v22 = vld [vmem:[%s3304_s11 + $0x3] ss:$0 sm:$0xff]  ;;  %p2704_p3 = por %p2703_p2, %p2702_p1 }
 0xf11   :  { %2560 = vmatpush3.bf16.msra.mxu0 %v1617_v55  ;;  %v2659_v55 = vld [vmem:[%s3309_s16] sm:$0xff]   ;;  %p2705_p4 = pnand %p2704_p3, %p2698_p0 }
 0xf12   :  { %2571 = vmatprep.subr.bf16.mxu0 %v2722_v49 }
 0xfd0   :  { %v1350_v56 = vpop.f32.mrb[44].mxu1 }
 0xfd1   :  { %v1356_v63 = vadd.f32 %v1350_v56, %v3104_v0  ;;  %v2527_v57 = vpop.f32.mrb[45].mxu1  ;;  %v1417_v0 = vadd.f32 %v2273_v22, %v1416_v43  ;;  %v2658_v43 = vld [vmem:[%s3307_s14 + $0x8] sm:$0xff]  }
 0xfd2   :  { %v1353_v58 = vpop.f32.mrb[46].mxu1  ;;  %v2660_v56 = vld [vmem:[%s3309_s16 + $0x8] sm:$0xff]   ;;  %v2662_v57 = vld [vmem:[%s3309_s16 + $0x18] sm:$0xff]  }
 0xfd3   :  { %v2528_v59 = vpop.f32.mrb[47].mxu1  ;;  %v1552_v8 = vpack.c.bf16 %v1417_v0, %v1417_v0  ;;  %v2302_v58 = vld [vmem:[%s3308_s15] ss:$0 sm:$0xff] }
 0xfd8   :  { %v1481_v61 = vpop.f32.mrb[48].mxu1 }
 0xfd9   :  { %v1482_v62 = vadd.f32 %v2282_v60, %v1481_v61  ;;  %v2543_v1 = vpop.f32.mrb[49].mxu1 }
 0xfda   :  { %v1484_v2 = vpop.f32.mrb[50].mxu1 }
 0xfdb   :  { %v1553_v3 = vpack.c.bf16 %v1482_v62, %v1482_v62  ;;  %v2544_v6 = vpop.f32.mrb[51].mxu1 }
 0xfdd   :  { %v1558_v7 = vsel %vm491_vm6, %v1553_v3, 0 }
 0xfde   :  { %2554 = vmatpush3.bf16.xpose.msra.mxu1 %v1558_v7 }
 0xfdf   :  { %2565 = vmatprep.subr.bf16.mxu1 %v2722_v49 }
 0xfe5   :  { %2556 = vmatmul.mubr.msk.bf16.vlgmr.msra.gmra.mrb[52].mxu1 %vm491_vm6, %v1552_v8 }
 0xfe6   :  { %2567 = vmatprep.mubr.msk.bf16.mxu1 %vm2723_vm2, %v2722_v49  ;;  %2566 = vmatpush3.bf16.msra.mxu1 %v1666_v23  ;;  %v2667_v23 = vld [vmem:[%s3314_s21 + $0x10] sm:$0xff]  }
 0xfe7   :  { %2579 = vmatprep.subr.bf16.mxu1 %v2722_v49 }
0x10b8   :  { %v1594_v9 = vpop.f32.mrb[52].mxu1 }
0x10b9   :  { %v2557_v10 = vpop.f32.mrb[53].mxu1  ;;  %v1600_v11 = vsel %vm538_vm7, %v1594_v9, -inf }
0x10ba   :  { %1601 = vmax.xlane.f32.xlu0 %v1600_v11  ;;  %v1597_v12 = vpop.f32.mrb[54].mxu1  ;;  %v2312_v10 = vld [vmem:[%s3310_s17] ss:$0 sm:$0xff] }
0x10bb   :  { %v2558_v40 = vpop.f32.mrb[55].mxu1 }
0x1147   :  { %v1602_v4 = vpop.xlane.xlu0 %1601 }
0x1148   :  { %v1603_v13 = vsub.f32 %v1594_v9, %v1602_v4 }
0x114a   :  { %v1604_v14 = vmul.f32 1.442695, %v1603_v13 }
0x114c   :  { %2685 = vpow2.f32 %v1604_v14  ;;  %v1911_v14 = vld [vmem:[%s3311_s18] sm:$0xf] }
0x1156   :  { %v2686_v15 = vpop.eup %2685 }
0x1157   :  { %v1606_v16 = vsel %vm538_vm7, %v2686_v15, 0.0 }
0x1158   :  { %1607 = vadd.xlane.f32.xlu1 %v1606_v16  ;;  %v2664_v16 = vld [vmem:[%s3312_s19 + $0x8] sm:$0xff]  }
0x11e5   :  { %v1608_v17 = vpop.xlane.xlu1 %1607 }
0x11e6   :  { %2687 = vrcp.f32 %v1608_v17 }
0x11f0   :  { %v2688_v18 = vpop.eup %2687 }
0x11f1   :  { %v1610_v19 = vmul.f32 %v2688_v18, %v2686_v15  ;;  %v2663_v15 = vld [vmem:[%s3312_s19] sm:$0xff]  }
0x11f3   :  { %v1611_v20 = vpack.c.bf16 %v1610_v19, %v1610_v19 }
0x11f5   :  { %2562 = vmatmul.mubr.msk.bf16.vlgmr.msra.gmra.mrb[36].mxu0 %vm552_vm8, %v1611_v20  ;;  %v2665_v20 = vld [vmem:[%s3314_s21] sm:$0xff]  }
0x11f6   :  { %2575 = vmatprep.mubr.msk.bf16.mxu0 %vm2723_vm2, %v2722_v49  ;;  %2572 = vmatpush3.bf16.msra.mxu0 %v2657_v42 }
0x11f7   :  { %2573 = vmatprep.subr.bf16.mxu0 %v2722_v49 }
0x11fa   :  { %2574 = vmatpush3.bf16.msra.mxu0 %v2658_v43 }
0x11fb   :  { %2591 = vmatprep.subr.mxu0 %v2722_v49 }
0x12c8   :  { %v1653_v24 = vpop.f32.mrb[36].mxu0 }
0x12c9   :  { %v1659_v25 = vpack.c.bf16 %v1653_v24, %v1653_v24  ;;  %v2563_v26 = vpop.f32.mrb[37].mxu0  ;;  %v2668_v24 = vld [vmem:[%s3314_s21 + $0x18] sm:$0xff]  }
0x12ca   :  { %v1656_v27 = vpop.f32.mrb[38].mxu0 }
0x12cb   :  { %v2564_v28 = vpop.f32.mrb[39].mxu0  ;;  %2568 = vmatmul.mubr.msk.bf16.vlgmr.msra.gmra.mrb[56].mxu1 %vm491_vm6, %v1659_v25  ;;  %v2315_v25 = vld [vmem:[%s3313_s20] ss:$0 sm:$0xff] }
0x12cc   :  { %2587 = vmatprep.mubr.msk.bf16.mxu1 %vm2723_vm2, %v2722_v49  ;;  %2580 = vmatpush3.bf16.msra.mxu1 %v2659_v55 }
0x12cd   :  { %2581 = vmatprep.subr.bf16.mxu1 %v2722_v49 }
0x12d0   :  { %2582 = vmatpush3.bf16.msra.mxu1 %v2660_v56 }
0x12d1   :  { %2583 = vmatprep.subr.bf16.mxu1 %v2722_v49 }
0x139e   :  { %v1702_v5 = vpop.f32.mrb[56].mxu1 }
0x139f   :  { %v1708_v30 = vadd.f32 %v1702_v5, %v1356_v63  ;;  %v2569_v31 = vpop.f32.mrb[57].mxu1  ;;  %v2661_v63 = vld [vmem:[%s3309_s16 + $0x10] sm:$0xff]  }
0x13a0   :  { %v1705_v32 = vpop.f32.mrb[58].mxu1  ;;  %2584 = vmatpush3.bf16.msra.mxu1 %v2661_v63 }
0x13a1   :  { %v1716_v33 = vadd.f32 %v2299_v29, %v1708_v30  ;;  %v2570_v34 = vpop.f32.mrb[59].mxu1  ;;  %2585 = vmatprep.subr.bf16.mxu1 %v2722_v49 }
0x13a3   :  { %v1719_v35 = vsel %vm229_vm1, %v1716_v33, 0.0 }
0x13a4   :  { %1720 = vadd.xlane.f32.xlu0 %v1719_v35  ;;  %2586 = vmatpush3.bf16.msra.mxu1 %v2662_v57 }
0x13a5   :  { %2604 = vmatprep.subr.bf16.mxu1 %v2722_v49 }
0x1431   :  { %v1721_v36 = vpop.xlane.xlu0 %1720 }
0x1432   :  { %v1722_v37 = vmul.f32 0.03125, %v1721_v36 }
0x1434   :  { %v1723_v38 = vsub.f32 %v1716_v33, %v1722_v37 }
0x1436   :  { %v1724_v39 = vmul.f32 %v1723_v38, %v1723_v38 }
0x1438   :  { %v1725_v41 = vsel %vm229_vm1, %v1724_v39, 0.0  ;;  %v2319_v39 = vld [vmem:[%s3315_s22] ss:$0 sm:$0xff] }
0x1439   :  { %1726 = vadd.xlane.f32.xlu1 %v1725_v41 }
0x14c6   :  { %v1727_v44 = vpop.xlane.xlu1 %1726 }
0x14c7   :  { %v1728_v45 = vmul.f32 0.03125, %v1727_v44 }
0x14c9   :  { %v1729_v46 = vadd.f32 1e-05, %v1728_v45 }
0x14cb   :  { %2689 = vrsqrt.f32 %v1729_v46 }
0x14d5   :  { %v2690_v47 = vpop.eup %2689 }
0x14d6   :  { %v1731_v50 = vmul.f32 %v2690_v47, %v1723_v38 }
0x14d8   :  { %v1738_v52 = vmul.f32 %v2300_v48, %v1731_v50 }
0x14da   :  { %v1745_v53 = vadd.f32 %v2301_v51, %v1738_v52 }
0x14dc   :  { %v1746_v54 = vpack.c.bf16 %v1745_v53, %v1745_v53 }
0x14de   :  { %2576 = vmatmul.mubr.msk.bf16.vlgmr.msra.gmra.mrb[40].mxu0 %vm315_vm3, %v1746_v54 }
0x14df   :  { %2593 = vmatprep.mubr.msk.f32.mxu0 %vm2723_vm2, %v2722_v49 }
0x15b1   :  { %v1807_v59 = vpop.f32.mrb[40].mxu0 }
0x15b2   :  { %v1808_v60 = vadd.f32 %v2302_v58, %v1807_v59  ;;  %v2577_v61 = vpop.f32.mrb[41].mxu0 }
0x15b3   :  { %v1810_v62 = vpop.f32.mrb[42].mxu0 }
0x15b4   :  { %v2306_v1 = vmul.f32 -1.702, %v1808_v60  ;;  %v2578_v2 = vpop.f32.mrb[43].mxu0 }
0x15b6   :  { %v1815_v3 = vmul.f32 1.442695, %v2306_v1 }
0x15b8   :  { %2691 = vpow2.f32 %v1815_v3 }
0x15c2   :  { %v2692_v6 = vpop.eup %2691 }
0x15c3   :  { %v1817_v22 = vadd.f32 1.0, %v2692_v6 }
0x15c5   :  { %2693 = vrcp.f32 %v1817_v22 }
0x15cf   :  { %v2694_v7 = vpop.eup %2693 }
0x15d0   :  { %v1820_v0 = vmul.f32 %v2694_v7, %v1808_v60 }
0x15d2   :  { %v1821_v8 = vpack.c.bf16 %v1820_v0, %v1820_v0 }
0x15d4   :  { %2588 = vmatmul.mubr.msk.bf16.vlgmr.msra.gmra.mrb[60].mxu1 %vm181_vm0, %v1821_v8 }
0x15d5   :  { %2612 = vmatprep.mubr.msk.bf16.mxu1 %vm2723_vm2, %v2722_v49  ;;  %2605 = vmatpush3.bf16.msra.mxu1 %v2665_v20 }
0x15d6   :  { %2606 = vmatprep.subr.bf16.mxu1 %v2722_v49 }
0x15d9   :  { %2607 = vmatpush3.bf16.msra.mxu1 %v2666_v21 }
0x15da   :  { %2608 = vmatprep.subr.bf16.mxu1 %v2722_v49 }
0x15dd   :  { %2609 = vmatpush3.bf16.msra.mxu1 %v2667_v23 }
0x15de   :  { %2610 = vmatprep.subr.bf16.mxu1 %v2722_v49 }
0x15e1   :  { %2611 = vmatpush3.bf16.msra.mxu1 %v2668_v24 }
0x16a7   :  { %v1892_v9 = vpop.f32.mrb[60].mxu1 }
0x16a8   :  { %v1898_v11 = vadd.f32 %v1892_v9, %v1716_v33  ;;  %v2589_v12 = vpop.f32.mrb[61].mxu1 }
0x16a9   :  { %v1895_v40 = vpop.f32.mrb[62].mxu1 }
0x16aa   :  { %v1906_v4 = vadd.f32 %v2312_v10, %v1898_v11  ;;  %v2590_v13 = vpop.f32.mrb[63].mxu1 }
0x16ac   :  { %1907 = vst.msk [vmem:[#allocation2] sm:$0x1f] %vm229_vm1, %v1906_v4  ;;  %2592 = vmatpush3.msk.msra.mxu0 %vm1915_vm10, %v1906_v4 }
0x16ad   :  { %2594 = vmatmul.mubr.msk.f32.vlgmr.msra.gmra.mrb[44].mxu0 %vm552_vm8, %v1911_v14  ;;  %2596 = vmatprep.subr.bf16.mxu0 %v2722_v49 }
0x16ae   :  { %2597 = vmatpush3.bf16.msra.mxu0 %v2663_v15  ;;  %2600 = vmatprep.mubr.msk.bf16.mxu0 %vm2723_vm2, %v2722_v49 }
0x16af   :  { %2598 = vmatprep.subr.bf16.mxu0 %v2722_v49 }
0x16b2   :  { %2599 = vmatpush3.bf16.msra.mxu0 %v2664_v16 }
0x1780   :  { %v1985_v17 = vpop.f32.mrb[44].mxu0 }
0x1781   :  { %v1989_v18 = vpack.c.bf16 %v1985_v17, %v1985_v17  ;;  %v2595_v19 = vpop.f32.mrb[45].mxu0 }
0x1783   :  { %2601 = vmatmul.mubr.msk.bf16.vlgmr.msra.gmra.mrb[48].mxu0 %vm315_vm3, %v1989_v18 }
0x1856   :  { %v2050_v26 = vpop.f32.mrb[48].mxu0 }
0x1857   :  { %v2051_v27 = vadd.f32 %v2315_v25, %v2050_v26  ;;  %v2602_v28 = vpop.f32.mrb[49].mxu0 }
0x1858   :  { %v2053_v5 = vpop.f32.mrb[50].mxu0 }
0x1859   :  { %v2056_v29 = vmul.f32 %v2051_v27, %v2051_v27  ;;  %v2603_v30 = vpop.f32.mrb[51].mxu0 }
0x185b   :  { %v2057_v31 = vmul.f32 %v2056_v29, %v2051_v27 }
0x185d   :  { %v2058_v32 = vmul.f32 0.044715, %v2057_v31 }
0x185f   :  { %v2059_v33 = vadd.f32 %v2058_v32, %v2051_v27 }
0x1861   :  { %v2060_v34 = vmul.f32 0.7978846, %v2059_v33 }
0x1863   :  { %2695 = vtanh.f32 %v2060_v34 }
0x186d   :  { %v2696_v49 = vpop.eup %2695 }
0x186e   :  { %v2062_v35 = vadd.f32 1.0, %v2696_v49 }
0x1870   :  { %v2063_v36 = vmul.f32 0.5, %v2062_v35 }
0x1872   :  { %v2064_v37 = vmul.f32 %v2063_v36, %v2051_v27 }
0x1874   :  { %v2065_v38 = vpack.c.bf16 %v2064_v37, %v2064_v37 }
0x1876   :  { %2613 = vmatmul.mubr.msk.bf16.vlgmr.msra.gmra.mrb[64].mxu1 %vm181_vm0, %v2065_v38 }
0x1949   :  { %v2142_v41 = vpop.f32.mrb[64].mxu1 }
0x194a   :  { %v2143_v42 = vadd.f32 %v2319_v39, %v2142_v41  ;;  %v2614_v43 = vpop.f32.mrb[65].mxu1 }
0x194b   :  { %v2145_v44 = vpop.f32.mrb[66].mxu1 }
0x194c   :  { %v2615_v45 = vpop.f32.mrb[67].mxu1  ;;  %2149 = vst.msk [vmem:[#allocation3] sm:$0xf] %vm2148_vm11, %v2143_v42 }
0x194d   :  { %2708 = shalt.err (!%p2705_p4)
}
0x194e   :  { %s2709_s22 = scalar_lea.hbm %s3316_s23, 64 }
0x194f   :  { %p2710_p5 = scmp.ne.s32.totalorder %s3316_s23, %s2709_s22  ;;  %p2713_p6 = scmp.lt.u32.totalorder %s2709_s22, %s3316_s23 }
0x1951   :  { %p2715_p7 = pnand %p2713_p6, %p2710_p5 }
0x1953   :  { %2718 = shalt.err (!%p2715_p7)
}
0x1954   :  { %2159 = dma.vmem_to_hbm [thread:$0]  %s2157_s8, 64, %s3316_s23, [#allocation4]  }
0x1955   :  { %2719 = dma.done.wait [#allocation4], 64  }
0x1956   :  { %2720 = vsyncadd [#allocation4], 4294967232 }
0x1957   :  { %2163 = vsyncpa [#allocation4], 1 }

</bundles_post_ra>
